<compile_context>
chip_gen: v6e
topology: v6e:2x2x1
jax: 0.10.0
libtpu: 0.0.40
codegen_flags: <defaults>
</compile_context>

<pallas_src>
from typing import NamedTuple

import jax
import jax.numpy as jnp
from jax.experimental import pallas as pl
from jax.experimental.pallas import tpu as pltpu


def _round_up(a, b):
    return ((a + b - 1) // b) * b


def _linear_kernel(x_ref, w_ref, b_ref, o_ref):
    """Grid = (M tiles [parallel], N tiles [parallel], K tiles [arbitrary]).

    x_ref : (tm, tk)   x tile in its native dtype (cast to MXU dtype here)
    w_ref : (tk, tn)   weight tile, already transposed / cast / padded at setup
    b_ref : (1, tn)    f32 bias tile
    o_ref : (tm, tn)   f32 logits tile; VMEM-resident across the K axis and
                       used directly as the accumulator.
    """
    k = pl.program_id(2)

    @pl.when(k == 0)
    def _():
        # Initialize the resident accumulator with the broadcast bias.
        o_ref[...] = jnp.broadcast_to(b_ref[...], o_ref.shape).astype(o_ref.dtype)

    o_ref[...] += jnp.dot(
        x_ref[...].astype(w_ref.dtype), w_ref[...],
        preferred_element_type=jnp.float32,
    )


class LinearParams(NamedTuple):
    w_t: jax.Array      # (k_pad, n_pad) = weight.T, padded, weight_dtype
    bias: jax.Array     # (1, n_pad) f32, padded
    dim: int
    num_labels: int
    tk: int
    tn: int


def _select_kn_tiles(dim, num_labels):
    # N axis: lane-dense (multiple of 128). Single N tile up to 1024 so x is
    # never re-streamed per N tile; above that, 512-wide tiles bound pad waste.
    if num_labels <= 1024:
        tn = _round_up(num_labels, 128)
    else:
        tn = 512
    n_pad = _round_up(num_labels, tn)

    # K axis: single step up to dim=4096, else 4096-wide tiles.  Double-
    # buffered bf16 weight tile <= 2 * tk * tn * 2 B = 16 MiB.
    if dim <= 4096:
        tk = _round_up(dim, 128)
    else:
        tk = 4096
    k_pad = _round_up(dim, tk)
    return tk, k_pad, tn, n_pad


def prepare_linear_params(weight, bias, *, weight_dtype=jnp.bfloat16):
    """One-time setup: lay the nn.Linear parameters out for the kernel.

    weight : (num_labels, dim)  -- PyTorch nn.Linear layout
    bias   : (num_labels,)

    The transpose / dtype cast / zero-padding happen ONCE here instead of on
    every forward call (the weight stream dominates HBM traffic).
    """
    num_labels, dim = weight.shape
    tk, k_pad, tn, n_pad = _select_kn_tiles(dim, num_labels)
    w_t = jnp.pad(
        weight.T.astype(weight_dtype),
        ((0, k_pad - dim), (0, n_pad - num_labels)),
    )
    b_p = jnp.pad(
        bias.astype(jnp.float32).reshape(1, num_labels),
        ((0, 0), (0, n_pad - num_labels)),
    )
    return LinearParams(w_t=w_t, bias=b_p, dim=dim, num_labels=num_labels,
                        tk=tk, tn=tn)


def linear_classifier_forward(x, params: LinearParams):
    """Pallas forward of LinearClassifier: logits = x.view(B, -1) @ W.T + b.

    x : (B, ...) feature tensor (any float dtype; streamed as-is).
    Returns f32 logits of shape (B, num_labels).
    """
    B = x.shape[0]
    x2d = x.reshape(B, -1)                      # glue: flatten, like torch .view
    dim, num_labels = params.dim, params.num_labels
    assert x2d.shape[1] == dim

    tk, tn = params.tk, params.tn
    k_pad, n_pad = params.w_t.shape

    # Batch (M) tiling: bounds VMEM at large B and gives v7x's two TensorCores
    # a parallel axis; tm=256 matches the 2x256^2 MXU on v6e/v7x.
    if B <= 256:
        tm, m_pad = B, B
    else:
        tm = 256
        m_pad = _round_up(B, tm)

    # Only pad x when it is actually misaligned (dim = 768/1024/1536/2048 and
    # B % 256 == 0 skip this entirely).  No per-call dtype cast: x streams in
    # its native dtype and is cast to the MXU dtype in-kernel.
    if m_pad != B or k_pad != dim:
        x2d = jnp.pad(x2d, ((0, m_pad - B), (0, k_pad - dim)))

    grid = (m_pad // tm, n_pad // tn, k_pad // tk)  # parallel, parallel, reduction

    x_bytes = x2d.dtype.itemsize
    w_bytes = params.w_t.dtype.itemsize
    cost = pl.CostEstimate(
        flops=2 * m_pad * k_pad * n_pad,
        transcendentals=0,
        bytes_accessed=(
            (m_pad // tm) * k_pad * n_pad * w_bytes    # weight re-read per M tile
            + (n_pad // tn) * m_pad * k_pad * x_bytes  # x re-read per N tile
            + m_pad * n_pad * 4                        # f32 output
        ),
    )

    out = pl.pallas_call(
        _linear_kernel,
        out_shape=jax.ShapeDtypeStruct((m_pad, n_pad), jnp.float32),
        grid_spec=pltpu.PrefetchScalarGridSpec(
            num_scalar_prefetch=0,
            grid=grid,
            in_specs=[
                pl.BlockSpec((tm, tk), lambda m, n, k: (m, k)),   # x M/K tile
                pl.BlockSpec((tk, tn), lambda m, n, k: (k, n)),   # W K/N tile
                pl.BlockSpec((1, tn), lambda m, n, k: (0, n)),    # bias N tile
            ],
            # Same block across the K axis -> VMEM-resident f32 accumulator.
            out_specs=pl.BlockSpec((tm, tn), lambda m, n, k: (m, n)),
        ),
        compiler_params=pltpu.CompilerParams(
            dimension_semantics=("parallel", "parallel", "arbitrary"),
            # Largest config (tm=256, tk=4096, tn=1024, f32 x) needs ~27 MiB of
            # double-buffered VMEM; 48 MiB covers v5e's 16 MiB scoped default
            # and stays below v7x's 64 MiB physical VMEM.
            vmem_limit_bytes=48 * 1024 * 1024,
        ),
        cost_estimate=cost,
    )(x2d, params.w_t, params.bias)

    return out[:B, :num_labels]


if __name__ == "__main__":
    key = jax.random.PRNGKey(0)
    k_x, k_w = jax.random.split(key)

    # Small frozen-feature input: B=2, C=4, H=W=16  =>  dim = 4*16*16 = 1024
    B, C, H, W = 2, 4, 16, 16
    dim = C * H * W
    num_labels = 1000  # module default

    # TODO(synk): for real workloads, batch B >= 256 per call so the weight
    # stream is amortized and the parallel M axis actually has >1 tile.
    x = jax.random.normal(k_x, (B, C, H, W), dtype=jnp.float32)

    # Deterministic parameter init, matching the module's __init__:
    #   weight ~ Normal(0, 0.01), bias = 0
    weight = 0.01 * jax.random.normal(k_w, (num_labels, dim), dtype=jnp.float32)
    bias = jnp.zeros((num_labels,), dtype=jnp.float32)

    # One-time weight layout prep (hoisted out of the per-call path).
    params = prepare_linear_params(weight, bias)

    out = linear_classifier_forward(x, params)
    out = jax.block_until_ready(out)

    # Reference check in plain JAX (f32). Tolerance accounts for bf16-streamed
    # weights / bf16 MXU inputs with f32 accumulation.
    ref = x.reshape(B, -1) @ weight.T + bias
    assert out.shape == (B, num_labels)
    assert jnp.allclose(out, ref, atol=2e-2, rtol=2e-2), "mismatch vs reference"

    print("KERNEL_OK")
</pallas_src>

<mosaic_0001>
module attributes {stable_mosaic.version = 11 : i64} {
  func.func @_linear_kernel(%arg0: i32, %arg1: i32, %arg2: i32, %arg3: memref<2x1024xf32, #tpu.memory_space<vmem>>, %arg4: memref<1024x1024xbf16, #tpu.memory_space<vmem>>, %arg5: memref<1x1024xf32, #tpu.memory_space<vmem>>, %arg6: memref<2x1024xf32, #tpu.memory_space<vmem>>) attributes {dimension_semantics = [#tpu.dimension_semantics<parallel>, #tpu.dimension_semantics<parallel>, #tpu.dimension_semantics<arbitrary>], iteration_bounds = array<i64: 1, 1, 1>, scalar_prefetch = 0 : i64, scratch_operands = 0 : i64, tpu.core_type = #tpu.core_type<tc>, window_params = [{transform_indices = @transform_0, window_bounds = array<i64: 2, 1024>}, {transform_indices = @transform_1, window_bounds = array<i64: 1024, 1024>}, {transform_indices = @transform_2, window_bounds = array<i64: 1, 1024>}, {transform_indices = @transform_3, window_bounds = array<i64: 2, 1024>}]} {
    %c0_i32 = arith.constant 0 : i32
    %0 = arith.cmpi eq, %arg2, %c0_i32 : i32
    %1 = arith.extui %0 : i1 to i32
    %c0_i32_0 = arith.constant 0 : i32
    %2 = arith.cmpi ne, %1, %c0_i32_0 : i32
    scf.if %2 {
      %c0_8 = arith.constant 0 : index
      %c0_9 = arith.constant 0 : index
      %10 = vector.load %arg5[%c0_8, %c0_9] : memref<1x1024xf32, #tpu.memory_space<vmem>>, vector<1x1024xf32>
      %11 = vector.shape_cast %10 : vector<1x1024xf32> to vector<1x1024xf32>
      %12 = vector.broadcast %11 : vector<1x1024xf32> to vector<2x1024xf32>
      %c0_10 = arith.constant 0 : index
      %c0_11 = arith.constant 0 : index
      %13 = vector.load %arg6[%c0_10, %c0_11] : memref<2x1024xf32, #tpu.memory_space<vmem>>, vector<2x1024xf32>
      tpu.vector_store %arg6[%c0_10, %c0_11], %12 {strides = array<i32>} : memref<2x1024xf32, #tpu.memory_space<vmem>>, vector<2x1024xf32>,
    } else {
    }
    %c0 = arith.constant 0 : index
    %c0_1 = arith.constant 0 : index
    %3 = vector.load %arg6[%c0, %c0_1] : memref<2x1024xf32, #tpu.memory_space<vmem>>, vector<2x1024xf32>
    %c0_2 = arith.constant 0 : index
    %c0_3 = arith.constant 0 : index
    %4 = vector.load %arg3[%c0_2, %c0_3] : memref<2x1024xf32, #tpu.memory_space<vmem>>, vector<2x1024xf32>
    %5 = arith.truncf %4 : vector<2x1024xf32> to vector<2x1024xbf16>
    %c0_4 = arith.constant 0 : index
    %c0_5 = arith.constant 0 : index
    %6 = vector.load %arg4[%c0_4, %c0_5] : memref<1024x1024xbf16, #tpu.memory_space<vmem>>, vector<1024x1024xbf16>
    %cst = arith.constant dense<0.000000e+00> : vector<2x1024xf32>
    %7 = tpu.matmul %5, %6, %cst {dimension_numbers = #tpu.dot_dimension_numbers<[1], [0], [0], [1], [0, 0, 1, 1], [], []>} : vector<2x1024xbf16>, vector<1024x1024xbf16>, vector<2x1024xf32> -> vector<2x1024xf32>
    %8 = arith.addf %3, %7 : vector<2x1024xf32>
    %c0_6 = arith.constant 0 : index
    %c0_7 = arith.constant 0 : index
    %9 = vector.load %arg6[%c0_6, %c0_7] : memref<2x1024xf32, #tpu.memory_space<vmem>>, vector<2x1024xf32>
    tpu.vector_store %arg6[%c0_6, %c0_7], %8 {strides = array<i32>} : memref<2x1024xf32, #tpu.memory_space<vmem>>, vector<2x1024xf32>,
    return
  }
  func.func @transform_0(%arg0: i32, %arg1: i32, %arg2: i32) -> (i32, i32) {
    %c0_i32 = arith.constant 0 : i32
    return %arg0, %arg2 : i32, i32
  }
  func.func @transform_1(%arg0: i32, %arg1: i32, %arg2: i32) -> (i32, i32) {
    %c0_i32 = arith.constant 0 : i32
    return %arg2, %arg1 : i32, i32
  }
  func.func @transform_2(%arg0: i32, %arg1: i32, %arg2: i32) -> (i32, i32) {
    %c0_i32 = arith.constant 0 : i32
    %c0_i32_0 = arith.constant 0 : i32
    return %c0_i32, %arg1 : i32, i32
  }
  func.func @transform_3(%arg0: i32, %arg1: i32, %arg2: i32) -> (i32, i32) {
    %c0_i32 = arith.constant 0 : i32
    return %arg0, %arg1 : i32, i32
  }
}

</mosaic_0001>

<bundles_post_ra>
// kernel: tpu_custom_call.1
= control target key start
LH: loop header
LB: loop body
LE: loop exit
PB: predicated region body
PF: predicated region fallthrough
CT: control target
= control target key end

     0   :  { %8 = vsyncpa [#allocation3], 0  ;;  %s4756_s0 = inlined_call_operand.hbm [shape: f32[2,1024], index: 0, kind: input, shape index: {}]   ;;  %s4757_s1 = inlined_call_operand.hbm [shape: bf16[1024,1024], index: 1, kind: input, shape index: {}]   ;;  %s4758_s2 = inlined_call_operand.hbm [shape: f32[1,1024], index: 2, kind: input, shape index: {}]   ;;  %s4759_s3 = inlined_call_operand.hbm [shape: f32[2,1024], index: 3, kind: output, shape index: {}]  }
   0x1   :  { %9 = vsyncpa [#allocation6], 0 }
   0x2   :  { %10 = vsyncpa [#allocation4], 0  ;;  %s4583_s12 = smov [#allocation5]  }
   0x3   :  { %s26_s13 = sshll.u32 %s4583_s12, 4  ;;  %s27_s13 = int_to_ptr.vmem [resolvable:$true] %s26_s13 }
   0x4   :  { %s4505_s14 = scalar_lea.vmem %s27_s13, 65536  ;;  %p4510_p1 = scmp.lt.s32.totalorder %s27_s13, %s27_s13 }
   0x5   :  { %p4506_p0 = scmp.ne.s32.totalorder %s27_s13, %s4505_s14  ;;  %p4511_p2 = scmp.lt.s32.totalorder %s4505_s14, %s4505_s14 }
   0x7   :  { %p4512_p3 = por %p4511_p2, %p4510_p1 }
   0x9   :  { %p4513_p4 = pnand %p4512_p3, %p4506_p0 }
   0xb   :  { %4516 = shalt.err (!%p4513_p4)
}
   0xc   :  { %s4584_s15 = smov 512   ;;  %s4585_s16 = smov 32  }
   0xd   :  { %32 = dma.hbm_to_vmem [thread:$0]  %s4757_s1, 65536, %s27_s13, [#allocation6], %s4584_s15, %s4584_s15, %s4585_s16  }
   0xe   :  { %s4586_s19 = smov [#allocation2]   ;;  %s4587_s21 = smov [#allocation7]  }
   0xf   :  { %s17_s20 = sshll.u32 %s4586_s19, 4  ;;  %s39_s22 = sshll.u32 %s4587_s21, 4  ;;  %s18_s20 = int_to_ptr.vmem [resolvable:$true] %s17_s20  ;;  %s40_s22 = int_to_ptr.vmem [resolvable:$true] %s39_s22 }
  0x10   :  { %s4525_s23 = scalar_lea.vmem %s18_s20, 256  ;;  %p4530_p6 = scmp.lt.s32.totalorder %s18_s20, %s18_s20 }
  0x11   :  { %p4526_p5 = scmp.ne.s32.totalorder %s18_s20, %s4525_s23  ;;  %p4531_p7 = scmp.lt.s32.totalorder %s4525_s23, %s4525_s23 }
  0x13   :  { %p4532_p8 = por %p4531_p7, %p4530_p6 }
  0x15   :  { %p4533_p9 = pnand %p4532_p8, %p4526_p5 }
  0x17   :  { %4536 = shalt.err (!%p4533_p9)
}
  0x18   :  { %20 = dma.hbm_to_vmem [thread:$0]  %s4756_s0, 256, %s18_s20, [#allocation3]  }
  0x19   :  { %s4545_s26 = scalar_lea.vmem %s40_s22, 128  ;;  %p4550_p11 = scmp.lt.s32.totalorder %s40_s22, %s40_s22 }
  0x1a   :  { %p4546_p10 = scmp.ne.s32.totalorder %s40_s22, %s4545_s26  ;;  %p4551_p12 = scmp.lt.s32.totalorder %s4545_s26, %s4545_s26 }
  0x1c   :  { %p4552_p13 = por %p4551_p12, %p4550_p11 }
  0x1e   :  { %p4553_p0 = pnand %p4552_p13, %p4546_p10 }
  0x20   :  { %4556 = shalt.err (!%p4553_p0)
}
  0x21   :  { %42 = dma.hbm_to_vmem [thread:$0]  %s4758_s2, 128, %s40_s22, [#allocation6]  }
  0x22   :  { %4577 = dma.done.wait [#allocation3], 256  }
  0x23   :  { %4578 = vsyncadd [#allocation3], 4294967040 }
  0x24   :  { %4579 = dma.done.wait [#allocation6], 65664  }
  0x25   :  { %4580 = vsyncadd [#allocation6], 4294901632  ;;  %v240_v0 = vld [vmem:[#allocation5 + $0x1c0] sm:$0xff]  ;;  %v58_v32 = vlaneseq  ;;  %v4588_v33 = vmov 1983009808   ;;  %v130_v59 = vld [vmem:[#allocation2] sm:$0xff] }
  0x26   :  { %v244_v1 = vld [vmem:[#allocation5 + $0x1e0] sm:$0xff]  ;;  %v93_v34 = vunpack.c.l.s4 %v4588_v33  ;;  %s4589_s0 = smov [#allocation8]  }
  0x27   :  { %v368_v2 = vld [vmem:[#allocation5 + $0x5c0] sm:$0xff]  ;;  %v4033_v3 = vcombine.high %v240_v0, %v244_v1  ;;  %v4032_v5 = vcombine.low %v240_v0, %v244_v1  ;;  %v4619_v43 = vshrl.u32 %v58_v32, 7  ;;  %v134_v0 = vcombine.high %v130_v59, %v130_v59  ;;  %s3966_s2 = sshll.u32 %s4589_s0, 4  ;;  %s3967_s2 = int_to_ptr.vmem [resolvable:$true] %s3966_s2 }
  0x28   :  { %v372_v4 = vld [vmem:[#allocation5 + $0x5e0] sm:$0xff]  ;;  %v94_v44 = vunpack.c.0.s8 %v93_v34  ;;  %s4557_s28 = scalar_lea.vmem %s3967_s2, 256  ;;  %p4562_p2 = scmp.lt.s32.totalorder %s3967_s2, %s3967_s2 }
  0x29   :  { %v232_v6 = vld [vmem:[#allocation5 + $0x180] sm:$0xff]  ;;  %v4161_v8 = vcombine.high %v368_v2, %v372_v4  ;;  %v4160_v9 = vcombine.low %v368_v2, %v372_v4  ;;  %3256 = vmatprep.subr.bf16.mxu0 %v4033_v3  ;;  %p4558_p1 = scmp.ne.s32.totalorder %s3967_s2, %s4557_s28  ;;  %p4563_p3 = scmp.lt.s32.totalorder %s4557_s28, %s4557_s28 }
  0x2a   :  { %v236_v7 = vld [vmem:[#allocation5 + $0x1a0] sm:$0xff]  ;;  %3257 = vmatpush1.bf16.msra.mxu0 %v4032_v5  ;;  %v4622_v53 = vsub.s32 %v94_v44, %v4619_v43 }
  0x2b   :  { %v4025_v10 = vcombine.high %v232_v6, %v236_v7  ;;  %v360_v11 = vld [vmem:[#allocation5 + $0x580] sm:$0xff]  ;;  %3297 = vmatprep.subr.bf16.mxu1 %v4161_v8  ;;  %v4024_v18 = vcombine.low %v232_v6, %v236_v7  ;;  %p4564_p4 = por %p4563_p3, %p4562_p2 }
  0x2c   :  { %v364_v12 = vld [vmem:[#allocation5 + $0x5a0] sm:$0xff]  ;;  %3298 = vmatpush1.bf16.msra.mxu1 %v4160_v9  ;;  %v4625_v63 = vrot.slane %v130_v59, %v4622_v53  ;;  %v4630_v5 = vrot.slane %v134_v0, %v4622_v53 }
  0x2d   :  { %v224_v13 = vld [vmem:[#allocation5 + $0x140] sm:$0xff]  ;;  %v4153_v14 = vcombine.high %v360_v11, %v364_v12  ;;  %3258 = vmatprep.subr.bf16.mxu0 %v4025_v10  ;;  %v4152_v19 = vcombine.low %v360_v11, %v364_v12  ;;  %p4565_p5 = pnand %p4564_p4, %p4558_p1 }
  0x2e   :  { %v228_v15 = vld [vmem:[#allocation5 + $0x160] sm:$0xff]  ;;  %3259 = vmatpush1.bf16.msra.mxu0 %v4024_v18  ;;  %v149_v4 = vcombine.high %v4625_v63, %v4625_v63  ;;  %v150_v12 = vcombine.high %v4630_v5, %v4630_v5 }
  0x2f   :  { %v352_v16 = vld [vmem:[#allocation5 + $0x540] sm:$0xff]  ;;  %v4017_v20 = vcombine.high %v224_v13, %v228_v15  ;;  %3299 = vmatprep.subr.bf16.mxu1 %v4153_v14  ;;  %v4016_v26 = vcombine.low %v224_v13, %v228_v15 }
  0x30   :  { %v356_v17 = vld [vmem:[#allocation5 + $0x560] sm:$0xff]  ;;  %3300 = vmatpush1.bf16.msra.mxu1 %v4152_v19  ;;  %v4632_v11 = vpack.c.bf16 %v149_v4, %v149_v4  ;;  %v131_v4 = vld [vmem:[#allocation2 + $0x8] sm:$0xff] }
  0x31   :  { %v4145_v21 = vcombine.high %v352_v16, %v356_v17  ;;  %v216_v22 = vld [vmem:[#allocation5 + $0x100] sm:$0xff]  ;;  %3260 = vmatprep.subr.bf16.mxu0 %v4017_v20  ;;  %v4144_v27 = vcombine.low %v352_v16, %v356_v17  ;;  %v4637_v16 = vpack.c.bf16 %v150_v12, %v150_v12 }
  0x32   :  { %v220_v23 = vld [vmem:[#allocation5 + $0x120] sm:$0xff]  ;;  %3261 = vmatpush1.bf16.msra.mxu0 %v4016_v26  ;;  %3288 = vmatprep.mubr.bf16.mxu0 %v4632_v11 }
  0x33   :  { %v344_v24 = vld [vmem:[#allocation5 + $0x500] sm:$0xff]  ;;  %v4009_v28 = vcombine.high %v216_v22, %v220_v23  ;;  %3301 = vmatprep.subr.bf16.mxu1 %v4145_v21  ;;  %v4008_v37 = vcombine.low %v216_v22, %v220_v23  ;;  %3329 = vmatprep.mubr.bf16.mxu1 %v4637_v16 }
  0x34   :  { %v348_v25 = vld [vmem:[#allocation5 + $0x520] sm:$0xff]  ;;  %3302 = vmatpush1.bf16.msra.mxu1 %v4144_v27 }
  0x35   :  { %v4137_v29 = vcombine.high %v344_v24, %v348_v25  ;;  %v208_v30 = vld [vmem:[#allocation5 + $0xc0] sm:$0xff]  ;;  %3262 = vmatprep.subr.bf16.mxu0 %v4009_v28  ;;  %v4136_v38 = vcombine.low %v344_v24, %v348_v25 }
  0x36   :  { %v212_v31 = vld [vmem:[#allocation5 + $0xe0] sm:$0xff]  ;;  %3263 = vmatpush1.bf16.msra.mxu0 %v4008_v37 }
  0x37   :  { %v336_v35 = vld [vmem:[#allocation5 + $0x4c0] sm:$0xff]  ;;  %v4001_v39 = vcombine.high %v208_v30, %v212_v31  ;;  %3303 = vmatprep.subr.bf16.mxu1 %v4137_v29  ;;  %v4000_v47 = vcombine.low %v208_v30, %v212_v31 }
  0x38   :  { %v340_v36 = vld [vmem:[#allocation5 + $0x4e0] sm:$0xff]  ;;  %3304 = vmatpush1.bf16.msra.mxu1 %v4136_v38 }
  0x39   :  { %v4129_v40 = vcombine.high %v336_v35, %v340_v36  ;;  %v200_v41 = vld [vmem:[#allocation5 + $0x80] sm:$0xff]  ;;  %3264 = vmatprep.subr.bf16.mxu0 %v4001_v39  ;;  %v4128_v48 = vcombine.low %v336_v35, %v340_v36 }
  0x3a   :  { %v204_v42 = vld [vmem:[#allocation5 + $0xa0] sm:$0xff]  ;;  %3265 = vmatpush1.bf16.msra.mxu0 %v4000_v47 }
  0x3b   :  { %v328_v45 = vld [vmem:[#allocation5 + $0x480] sm:$0xff]  ;;  %v3993_v49 = vcombine.high %v200_v41, %v204_v42  ;;  %3305 = vmatprep.subr.bf16.mxu1 %v4129_v40  ;;  %v3992_v56 = vcombine.low %v200_v41, %v204_v42 }
  0x3c   :  { %v332_v46 = vld [vmem:[#allocation5 + $0x4a0] sm:$0xff]  ;;  %3306 = vmatpush1.bf16.msra.mxu1 %v4128_v48 }
  0x3d   :  { %v4121_v50 = vcombine.high %v328_v45, %v332_v46  ;;  %v192_v51 = vld [vmem:[#allocation5 + $0x40] sm:$0xff]  ;;  %3266 = vmatprep.subr.bf16.mxu0 %v3993_v49  ;;  %v4120_v57 = vcombine.low %v328_v45, %v332_v46 }
  0x3e   :  { %v196_v52 = vld [vmem:[#allocation5 + $0x60] sm:$0xff]  ;;  %3267 = vmatpush1.bf16.msra.mxu0 %v3992_v56 }
  0x3f   :  { %v320_v54 = vld [vmem:[#allocation5 + $0x440] sm:$0xff]  ;;  %v3985_v58 = vcombine.high %v192_v51, %v196_v52  ;;  %3307 = vmatprep.subr.bf16.mxu1 %v4121_v50  ;;  %v3984_v3 = vcombine.low %v192_v51, %v196_v52 }
  0x40   :  { %v324_v55 = vld [vmem:[#allocation5 + $0x460] sm:$0xff]  ;;  %3308 = vmatpush1.bf16.msra.mxu1 %v4120_v57 }
  0x41   :  { %v4113_v60 = vcombine.high %v320_v54, %v324_v55  ;;  %v184_v61 = vld [vmem:[#allocation5] sm:$0xff]  ;;  %3268 = vmatprep.subr.bf16.mxu0 %v3985_v58  ;;  %v4112_v6 = vcombine.low %v320_v54, %v324_v55 }
  0x42   :  { %v188_v62 = vld [vmem:[#allocation5 + $0x20] sm:$0xff]  ;;  %3269 = vmatpush1.bf16.msra.mxu0 %v3984_v3 }
  0x43   :  { %v312_v1 = vld [vmem:[#allocation5 + $0x400] sm:$0xff]  ;;  %v3977_v7 = vcombine.high %v184_v61, %v188_v62  ;;  %3309 = vmatprep.subr.bf16.mxu1 %v4113_v60  ;;  %v3976_v15 = vcombine.low %v184_v61, %v188_v62 }
  0x44   :  { %v316_v2 = vld [vmem:[#allocation5 + $0x420] sm:$0xff]  ;;  %3310 = vmatpush1.bf16.msra.mxu1 %v4112_v6 }
  0x45   :  { %v4105_v8 = vcombine.high %v312_v1, %v316_v2  ;;  %v304_v9 = vld [vmem:[#allocation5 + $0x3c0] sm:$0xff]  ;;  %3270 = vmatprep.subr.bf16.mxu0 %v3977_v7  ;;  %v4104_v17 = vcombine.low %v312_v1, %v316_v2 }
  0x46   :  { %v308_v10 = vld [vmem:[#allocation5 + $0x3e0] sm:$0xff]  ;;  %3271 = vmatpush1.bf16.msra.mxu0 %v3976_v15 }
  0x47   :  { %v432_v13 = vld [vmem:[#allocation5 + $0x7c0] sm:$0xff]  ;;  %v4097_v18 = vcombine.high %v304_v9, %v308_v10  ;;  %3311 = vmatprep.subr.bf16.mxu1 %v4105_v8  ;;  %v4096_v24 = vcombine.low %v304_v9, %v308_v10 }
  0x48   :  { %v436_v14 = vld [vmem:[#allocation5 + $0x7e0] sm:$0xff]  ;;  %3312 = vmatpush1.bf16.msra.mxu1 %v4104_v17 }
  0x49   :  { %v4225_v19 = vcombine.high %v432_v13, %v436_v14  ;;  %v296_v20 = vld [vmem:[#allocation5 + $0x380] sm:$0xff]  ;;  %3272 = vmatprep.subr.bf16.mxu0 %v4097_v18  ;;  %v4224_v25 = vcombine.low %v432_v13, %v436_v14  ;;  %v151_v14 = vcombine.high %v131_v4, %v131_v4 }
  0x4a   :  { %v300_v21 = vld [vmem:[#allocation5 + $0x3a0] sm:$0xff]  ;;  %3273 = vmatpush2.bf16.msra.mxu0 %v4096_v24 }
  0x4b   :  { %v424_v22 = vld [vmem:[#allocation5 + $0x780] sm:$0xff]  ;;  %v4089_v26 = vcombine.high %v296_v20, %v300_v21  ;;  %3313 = vmatprep.subr.bf16.mxu1 %v4225_v19  ;;  %v4088_v32 = vcombine.low %v296_v20, %v300_v21 }
  0x4c   :  { %v428_v23 = vld [vmem:[#allocation5 + $0x7a0] sm:$0xff]  ;;  %3314 = vmatpush2.bf16.msra.mxu1 %v4224_v25  ;;  %v4644_v25 = vrot.slane %v151_v14, %v4622_v53 }
  0x4d   :  { %v4217_v27 = vcombine.high %v424_v22, %v428_v23  ;;  %v288_v28 = vld [vmem:[#allocation5 + $0x340] sm:$0xff]  ;;  %3274 = vmatprep.subr.bf16.mxu0 %v4089_v26  ;;  %v4216_v33 = vcombine.low %v424_v22, %v428_v23  ;;  %v4641_v22 = vrot.slane %v131_v4, %v4622_v53 }
  0x4e   :  { %v292_v29 = vld [vmem:[#allocation5 + $0x360] sm:$0xff]  ;;  %3275 = vmatpush2.bf16.msra.mxu0 %v4088_v32 }
  0x4f   :  { %v416_v30 = vld [vmem:[#allocation5 + $0x740] sm:$0xff]  ;;  %v4081_v34 = vcombine.high %v288_v28, %v292_v29  ;;  %3315 = vmatprep.subr.bf16.mxu1 %v4217_v27  ;;  %v4080_v40 = vcombine.low %v288_v28, %v292_v29  ;;  %v166_v32 = vcombine.high %v4641_v22, %v4641_v22 }
  0x50   :  { %v420_v31 = vld [vmem:[#allocation5 + $0x760] sm:$0xff]  ;;  %3316 = vmatpush2.bf16.msra.mxu1 %v4216_v33  ;;  %v4650_v33 = vpack.c.bf16 %v4625_v63, %v4625_v63 }
  0x51   :  { %v4209_v35 = vcombine.high %v416_v30, %v420_v31  ;;  %v280_v36 = vld [vmem:[#allocation5 + $0x300] sm:$0xff]  ;;  %3276 = vmatprep.subr.bf16.mxu0 %v4081_v34  ;;  %v4208_v41 = vcombine.low %v416_v30, %v420_v31 }
  0x52   :  { %v284_v37 = vld [vmem:[#allocation5 + $0x320] sm:$0xff]  ;;  %3277 = vmatpush2.bf16.msra.mxu0 %v4080_v40 }
  0x53   :  { %v408_v38 = vld [vmem:[#allocation5 + $0x700] sm:$0xff]  ;;  %v4073_v42 = vcombine.high %v280_v36, %v284_v37  ;;  %3317 = vmatprep.subr.bf16.mxu1 %v4209_v35  ;;  %v4072_v49 = vcombine.low %v280_v36, %v284_v37  ;;  %v167_v36 = vcombine.high %v4644_v25, %v4644_v25  ;;  %v4656_v37 = vpack.c.bf16 %v4630_v5, %v4630_v5 }
  0x54   :  { %v412_v39 = vld [vmem:[#allocation5 + $0x720] sm:$0xff]  ;;  %3318 = vmatpush2.bf16.msra.mxu1 %v4208_v41 }
  0x55   :  { %v4201_v44 = vcombine.high %v408_v38, %v412_v39  ;;  %v272_v45 = vld [vmem:[#allocation5 + $0x2c0] sm:$0xff]  ;;  %3278 = vmatprep.subr.bf16.mxu0 %v4073_v42  ;;  %v4200_v50 = vcombine.low %v408_v38, %v412_v39 }
  0x56   :  { %v276_v46 = vld [vmem:[#allocation5 + $0x2e0] sm:$0xff]  ;;  %3279 = vmatpush2.bf16.msra.mxu0 %v4072_v49 }
  0x57   :  { %v400_v47 = vld [vmem:[#allocation5 + $0x6c0] sm:$0xff]  ;;  %v4065_v51 = vcombine.high %v272_v45, %v276_v46  ;;  %3319 = vmatprep.subr.bf16.mxu1 %v4201_v44  ;;  %v4064_v58 = vcombine.low %v272_v45, %v276_v46  ;;  %v4658_v44 = vpack.c.bf16 %v166_v32, %v166_v32 }
  0x58   :  { %v404_v48 = vld [vmem:[#allocation5 + $0x6e0] sm:$0xff]  ;;  %3320 = vmatpush2.bf16.msra.mxu1 %v4200_v50 }
  0x59   :  { %v4193_v52 = vcombine.high %v400_v47, %v404_v48  ;;  %v264_v54 = vld [vmem:[#allocation5 + $0x280] sm:$0xff]  ;;  %3280 = vmatprep.subr.bf16.mxu0 %v4065_v51  ;;  %v4192_v59 = vcombine.low %v400_v47, %v404_v48  ;;  %v4661_v47 = vpack.c.bf16 %v167_v36, %v167_v36 }
  0x5a   :  { %v268_v55 = vld [vmem:[#allocation5 + $0x2a0] sm:$0xff]  ;;  %3281 = vmatpush2.bf16.msra.mxu0 %v4064_v58 }
  0x5b   :  { %v392_v56 = vld [vmem:[#allocation5 + $0x680] sm:$0xff]  ;;  %v4057_v60 = vcombine.high %v264_v54, %v268_v55  ;;  %3321 = vmatprep.subr.bf16.mxu1 %v4193_v52  ;;  %v4056_v3 = vcombine.low %v264_v54, %v268_v55 }
  0x5c   :  { %v396_v57 = vld [vmem:[#allocation5 + $0x6a0] sm:$0xff]  ;;  %3322 = vmatpush2.bf16.msra.mxu1 %v4192_v59 }
  0x5d   :  { %v4185_v61 = vcombine.high %v392_v56, %v396_v57  ;;  %v256_v62 = vld [vmem:[#allocation5 + $0x240] sm:$0xff]  ;;  %3282 = vmatprep.subr.bf16.mxu0 %v4057_v60  ;;  %v4184_v6 = vcombine.low %v392_v56, %v396_v57 }
  0x5e   :  { %v260_v0 = vld [vmem:[#allocation5 + $0x260] sm:$0xff]  ;;  %3283 = vmatpush2.bf16.msra.mxu0 %v4056_v3 }
  0x5f   :  { %v384_v1 = vld [vmem:[#allocation5 + $0x640] sm:$0xff]  ;;  %v4049_v7 = vcombine.high %v256_v62, %v260_v0  ;;  %3323 = vmatprep.subr.bf16.mxu1 %v4185_v61  ;;  %v4048_v15 = vcombine.low %v256_v62, %v260_v0 }
  0x60   :  { %v388_v2 = vld [vmem:[#allocation5 + $0x660] sm:$0xff]  ;;  %3324 = vmatpush2.bf16.msra.mxu1 %v4184_v6 }
  0x61   :  { %v4177_v8 = vcombine.high %v384_v1, %v388_v2  ;;  %v248_v9 = vld [vmem:[#allocation5 + $0x200] sm:$0xff]  ;;  %3284 = vmatprep.subr.bf16.mxu0 %v4049_v7  ;;  %v4176_v17 = vcombine.low %v384_v1, %v388_v2 }
  0x62   :  { %v252_v10 = vld [vmem:[#allocation5 + $0x220] sm:$0xff]  ;;  %3285 = vmatpush2.bf16.msra.mxu0 %v4048_v15 }
  0x63   :  { %v376_v12 = vld [vmem:[#allocation5 + $0x600] sm:$0xff]  ;;  %v4041_v18 = vcombine.high %v248_v9, %v252_v10  ;;  %3325 = vmatprep.subr.bf16.mxu1 %v4177_v8  ;;  %v4040_v26 = vcombine.low %v248_v9, %v252_v10 }
  0x64   :  { %v380_v13 = vld [vmem:[#allocation5 + $0x620] sm:$0xff]  ;;  %3326 = vmatpush2.bf16.msra.mxu1 %v4176_v17 }
  0x65   :  { %v4169_v19 = vcombine.high %v376_v12, %v380_v13  ;;  %v496_v20 = vld [vmem:[#allocation5 + $0x9c0] sm:$0xff]  ;;  %3286 = vmatprep.subr.bf16.mxu0 %v4041_v18  ;;  %v4168_v27 = vcombine.low %v376_v12, %v380_v13 }
  0x66   :  { %v500_v21 = vld [vmem:[#allocation5 + $0x9e0] sm:$0xff]  ;;  %3287 = vmatpush2.bf16.msra.mxu0 %v4040_v26 }
  0x67   :  { %v624_v23 = vld [vmem:[#allocation5 + $0xdc0] sm:$0xff]  ;;  %v4289_v28 = vcombine.high %v496_v20, %v500_v21  ;;  %3327 = vmatprep.subr.bf16.mxu1 %v4169_v19  ;;  %v4288_v38 = vcombine.low %v496_v20, %v500_v21 }
  0x68   :  { %v628_v24 = vld [vmem:[#allocation5 + $0xde0] sm:$0xff]  ;;  %3328 = vmatpush2.bf16.msra.mxu1 %v4168_v27 }
  0x69   :  { %v4417_v29 = vcombine.high %v624_v23, %v628_v24  ;;  %v488_v30 = vld [vmem:[#allocation5 + $0x980] sm:$0xff]  ;;  %3338 = vmatprep.subr.bf16.mxu0 %v4289_v28  ;;  %v4416_v39 = vcombine.low %v624_v23, %v628_v24  ;;  %3289 = vmatmul.mubr.bf16.vlgmr.msra.gmra.mxu0 %v4650_v33 }
  0x6a   :  { %v492_v31 = vld [vmem:[#allocation5 + $0x9a0] sm:$0xff]  ;;  %3339 = vmatpush1.bf16.msra.mxu0 %v4288_v38  ;;  %3370 = vmatprep.mubr.bf16.mxu0 %v4658_v44 }
  0x6b   :  { %v616_v34 = vld [vmem:[#allocation5 + $0xd80] sm:$0xff]  ;;  %v4281_v40 = vcombine.high %v488_v30, %v492_v31  ;;  %3379 = vmatprep.subr.bf16.mxu1 %v4417_v29  ;;  %3330 = vmatmul.mubr.bf16.vlgmr.msra.gmra.mxu1 %v4656_v37  ;;  %v4280_v5 = vcombine.low %v488_v30, %v492_v31 }
  0x6c   :  { %v620_v35 = vld [vmem:[#allocation5 + $0xda0] sm:$0xff]  ;;  %3380 = vmatpush1.bf16.msra.mxu1 %v4416_v39  ;;  %3411 = vmatprep.mubr.bf16.mxu1 %v4661_v47 }
  0x6d   :  { %v4409_v41 = vcombine.high %v616_v34, %v620_v35  ;;  %v480_v42 = vld [vmem:[#allocation5 + $0x940] sm:$0xff]  ;;  %3340 = vmatprep.subr.bf16.mxu0 %v4281_v40  ;;  %v4408_v48 = vcombine.low %v616_v34, %v620_v35 }
  0x6e   :  { %v484_v63 = vld [vmem:[#allocation5 + $0x960] sm:$0xff]  ;;  %3341 = vmatpush1.bf16.msra.mxu0 %v4280_v5 }
  0x6f   :  { %v608_v45 = vld [vmem:[#allocation5 + $0xd40] sm:$0xff]  ;;  %v4273_v49 = vcombine.high %v480_v42, %v484_v63  ;;  %3381 = vmatprep.subr.bf16.mxu1 %v4409_v41  ;;  %v4272_v56 = vcombine.low %v480_v42, %v484_v63 }
  0x70   :  { %v612_v46 = vld [vmem:[#allocation5 + $0xd60] sm:$0xff]  ;;  %3382 = vmatpush1.bf16.msra.mxu1 %v4408_v48 }
  0x71   :  { %v4401_v50 = vcombine.high %v608_v45, %v612_v46  ;;  %v472_v51 = vld [vmem:[#allocation5 + $0x900] sm:$0xff]  ;;  %3342 = vmatprep.subr.bf16.mxu0 %v4273_v49  ;;  %v4400_v57 = vcombine.low %v608_v45, %v612_v46 }
  0x72   :  { %v476_v52 = vld [vmem:[#allocation5 + $0x920] sm:$0xff]  ;;  %3343 = vmatpush1.bf16.msra.mxu0 %v4272_v56 }
  0x73   :  { %v600_v54 = vld [vmem:[#allocation5 + $0xd00] sm:$0xff]  ;;  %v4265_v58 = vcombine.high %v472_v51, %v476_v52  ;;  %3383 = vmatprep.subr.bf16.mxu1 %v4401_v50  ;;  %v4264_v1 = vcombine.low %v472_v51, %v476_v52 }
  0x74   :  { %v604_v55 = vld [vmem:[#allocation5 + $0xd20] sm:$0xff]  ;;  %3384 = vmatpush1.bf16.msra.mxu1 %v4400_v57 }
  0x75   :  { %v4393_v59 = vcombine.high %v600_v54, %v604_v55  ;;  %v464_v60 = vld [vmem:[#allocation5 + $0x8c0] sm:$0xff]  ;;  %3344 = vmatprep.subr.bf16.mxu0 %v4265_v58  ;;  %v4392_v2 = vcombine.low %v600_v54, %v604_v55 }
  0x76   :  { %v468_v61 = vld [vmem:[#allocation5 + $0x8e0] sm:$0xff]  ;;  %3345 = vmatpush1.bf16.msra.mxu0 %v4264_v1 }
  0x77   :  { %v592_v62 = vld [vmem:[#allocation5 + $0xcc0] sm:$0xff]  ;;  %v4257_v3 = vcombine.high %v464_v60, %v468_v61  ;;  %3385 = vmatprep.subr.bf16.mxu1 %v4393_v59  ;;  %v4256_v10 = vcombine.low %v464_v60, %v468_v61 }
  0x78   :  { %v596_v0 = vld [vmem:[#allocation5 + $0xce0] sm:$0xff]  ;;  %3386 = vmatpush1.bf16.msra.mxu1 %v4392_v2 }
  0x79   :  { %v4385_v4 = vcombine.high %v592_v62, %v596_v0  ;;  %v456_v6 = vld [vmem:[#allocation5 + $0x880] sm:$0xff]  ;;  %3346 = vmatprep.subr.bf16.mxu0 %v4257_v3  ;;  %v4384_v12 = vcombine.low %v592_v62, %v596_v0 }
  0x7a   :  { %v460_v7 = vld [vmem:[#allocation5 + $0x8a0] sm:$0xff]  ;;  %3347 = vmatpush1.bf16.msra.mxu0 %v4256_v10 }
  0x7b   :  { %v584_v8 = vld [vmem:[#allocation5 + $0xc80] sm:$0xff]  ;;  %v4249_v13 = vcombine.high %v456_v6, %v460_v7  ;;  %3387 = vmatprep.subr.bf16.mxu1 %v4385_v4  ;;  %v4248_v20 = vcombine.low %v456_v6, %v460_v7 }
  0x7c   :  { %v588_v9 = vld [vmem:[#allocation5 + $0xca0] sm:$0xff]  ;;  %3388 = vmatpush1.bf16.msra.mxu1 %v4384_v12 }
  0x7d   :  { %v4377_v14 = vcombine.high %v584_v8, %v588_v9  ;;  %v448_v15 = vld [vmem:[#allocation5 + $0x840] sm:$0xff]  ;;  %3348 = vmatprep.subr.bf16.mxu0 %v4249_v13  ;;  %v4376_v21 = vcombine.low %v584_v8, %v588_v9 }
  0x7e   :  { %v452_v17 = vld [vmem:[#allocation5 + $0x860] sm:$0xff]  ;;  %3349 = vmatpush1.bf16.msra.mxu0 %v4248_v20 }
  0x7f   :  { %v576_v18 = vld [vmem:[#allocation5 + $0xc40] sm:$0xff]  ;;  %v4241_v23 = vcombine.high %v448_v15, %v452_v17  ;;  %3389 = vmatprep.subr.bf16.mxu1 %v4377_v14  ;;  %v4240_v30 = vcombine.low %v448_v15, %v452_v17 }
  0x80   :  { %v580_v19 = vld [vmem:[#allocation5 + $0xc60] sm:$0xff]  ;;  %3390 = vmatpush1.bf16.msra.mxu1 %v4376_v21 }
  0x81   :  { %v4369_v24 = vcombine.high %v576_v18, %v580_v19  ;;  %v440_v26 = vld [vmem:[#allocation5 + $0x800] sm:$0xff]  ;;  %3350 = vmatprep.subr.bf16.mxu0 %v4241_v23  ;;  %v4368_v31 = vcombine.low %v576_v18, %v580_v19 }
  0x82   :  { %v444_v27 = vld [vmem:[#allocation5 + $0x820] sm:$0xff]  ;;  %3351 = vmatpush1.bf16.msra.mxu0 %v4240_v30 }
  0x83   :  { %v568_v28 = vld [vmem:[#allocation5 + $0xc00] sm:$0xff]  ;;  %v4233_v32 = vcombine.high %v440_v26, %v444_v27  ;;  %3391 = vmatprep.subr.bf16.mxu1 %v4369_v24  ;;  %v4232_v40 = vcombine.low %v440_v26, %v444_v27 }
  0x84   :  { %v572_v29 = vld [vmem:[#allocation5 + $0xc20] sm:$0xff]  ;;  %3392 = vmatpush1.bf16.msra.mxu1 %v4368_v31 }
  0x85   :  { %v4361_v34 = vcombine.high %v568_v28, %v572_v29  ;;  %v560_v35 = vld [vmem:[#allocation5 + $0xbc0] sm:$0xff]  ;;  %3352 = vmatprep.subr.bf16.mxu0 %v4233_v32  ;;  %v4360_v41 = vcombine.low %v568_v28, %v572_v29 }
  0x86   :  { %v564_v36 = vld [vmem:[#allocation5 + $0xbe0] sm:$0xff]  ;;  %3353 = vmatpush1.bf16.msra.mxu0 %v4232_v40 }
  0x87   :  { %v688_v38 = vld [vmem:[#allocation5 + $0xfc0] sm:$0xff]  ;;  %v4353_v42 = vcombine.high %v560_v35, %v564_v36  ;;  %3393 = vmatprep.subr.bf16.mxu1 %v4361_v34  ;;  %v4352_v49 = vcombine.low %v560_v35, %v564_v36 }
  0x88   :  { %v692_v39 = vld [vmem:[#allocation5 + $0xfe0] sm:$0xff]  ;;  %3394 = vmatpush1.bf16.msra.mxu1 %v4360_v41 }
  0x89   :  { %v4481_v63 = vcombine.high %v688_v38, %v692_v39  ;;  %v552_v45 = vld [vmem:[#allocation5 + $0xb80] sm:$0xff]  ;;  %3354 = vmatprep.subr.bf16.mxu0 %v4353_v42  ;;  %v4480_v50 = vcombine.low %v688_v38, %v692_v39 }
  0x8a   :  { %v556_v46 = vld [vmem:[#allocation5 + $0xba0] sm:$0xff]  ;;  %3355 = vmatpush2.bf16.msra.mxu0 %v4352_v49  ;;  %v369_v49 = vld [vmem:[#allocation5 + $0x5c8] sm:$0xff] }
  0x8b   :  { %v680_v5 = vld [vmem:[#allocation5 + $0xf80] sm:$0xff]  ;;  %v4345_v51 = vcombine.high %v552_v45, %v556_v46  ;;  %3395 = vmatprep.subr.bf16.mxu1 %v4481_v63  ;;  %v4344_v58 = vcombine.low %v552_v45, %v556_v46 }
  0x8c   :  { %v684_v48 = vld [vmem:[#allocation5 + $0xfa0] sm:$0xff]  ;;  %3396 = vmatpush2.bf16.msra.mxu1 %v4480_v50  ;;  %v373_v50 = vld [vmem:[#allocation5 + $0x5e8] sm:$0xff] }
  0x8d   :  { %v4473_v52 = vcombine.high %v680_v5, %v684_v48  ;;  %v544_v54 = vld [vmem:[#allocation5 + $0xb40] sm:$0xff]  ;;  %3356 = vmatprep.subr.bf16.mxu0 %v4345_v51  ;;  %v4472_v59 = vcombine.low %v680_v5, %v684_v48  ;;  %v241_v5 = vld [vmem:[#allocation5 + $0x1c8] sm:$0xff] }
  0x8e   :  { %v548_v55 = vld [vmem:[#allocation5 + $0xb60] sm:$0xff]  ;;  %3357 = vmatpush2.bf16.msra.mxu0 %v4344_v58  ;;  %v245_v48 = vld [vmem:[#allocation5 + $0x1e8] sm:$0xff]  ;;  %v4668_v58 = vpack.c.bf16 %v4641_v22, %v4641_v22 }
  0x8f   :  { %v672_v56 = vld [vmem:[#allocation5 + $0xf40] sm:$0xff]  ;;  %v4337_v60 = vcombine.high %v544_v54, %v548_v55  ;;  %3397 = vmatprep.subr.bf16.mxu1 %v4473_v52  ;;  %v4336_v3 = vcombine.low %v544_v54, %v548_v55  ;;  %v4035_v54 = vcombine.high %v241_v5, %v245_v48  ;;  %v4163_v55 = vcombine.high %v369_v49, %v373_v50  ;;  %v353_v22 = vld [vmem:[#allocation5 + $0x548] sm:$0xff] }
  0x90   :  { %v676_v57 = vld [vmem:[#allocation5 + $0xf60] sm:$0xff]  ;;  %3398 = vmatpush2.bf16.msra.mxu1 %v4472_v59  ;;  %v361_v59 = vld [vmem:[#allocation5 + $0x588] sm:$0xff] }
  0x91   :  { %v4465_v61 = vcombine.high %v672_v56, %v676_v57  ;;  %v536_v62 = vld [vmem:[#allocation5 + $0xb00] sm:$0xff]  ;;  %3358 = vmatprep.subr.bf16.mxu0 %v4337_v60  ;;  %v4464_v4 = vcombine.low %v672_v56, %v676_v57  ;;  %v233_v56 = vld [vmem:[#allocation5 + $0x188] sm:$0xff] }
  0x92   :  { %v540_v0 = vld [vmem:[#allocation5 + $0xb20] sm:$0xff]  ;;  %3359 = vmatpush2.bf16.msra.mxu0 %v4336_v3  ;;  %v237_v57 = vld [vmem:[#allocation5 + $0x1a8] sm:$0xff] }
  0x93   :  { %v664_v1 = vld [vmem:[#allocation5 + $0xf00] sm:$0xff]  ;;  %v4329_v6 = vcombine.high %v536_v62, %v540_v0  ;;  %3399 = vmatprep.subr.bf16.mxu1 %v4465_v61  ;;  %v4328_v13 = vcombine.low %v536_v62, %v540_v0  ;;  %v365_v60 = vld [vmem:[#allocation5 + $0x5a8] sm:$0xff]  ;;  %v4672_v61 = vpack.c.bf16 %v4644_v25, %v4644_v25  ;;  %v4034_v62 = vcombine.low %v241_v5, %v245_v48 }
  0x94   :  { %v668_v2 = vld [vmem:[#allocation5 + $0xf20] sm:$0xff]  ;;  %3400 = vmatpush2.bf16.msra.mxu1 %v4464_v4  ;;  %v4162_v0 = vcombine.low %v369_v49, %v373_v50  ;;  %v225_v3 = vld [vmem:[#allocation5 + $0x148] sm:$0xff]  ;;  %v4154_v25 = vcombine.low %v361_v59, %v365_v60 }
  0x95   :  { %v4457_v7 = vcombine.high %v664_v1, %v668_v2  ;;  %v528_v8 = vld [vmem:[#allocation5 + $0xac0] sm:$0xff]  ;;  %3360 = vmatprep.subr.bf16.mxu0 %v4329_v6  ;;  %v4456_v14 = vcombine.low %v664_v1, %v668_v2  ;;  %v4027_v1 = vcombine.high %v233_v56, %v237_v57  ;;  %v4155_v2 = vcombine.high %v361_v59, %v365_v60  ;;  %v229_v4 = vld [vmem:[#allocation5 + $0x168] sm:$0xff] }
  0x96   :  { %v532_v9 = vld [vmem:[#allocation5 + $0xae0] sm:$0xff]  ;;  %3361 = vmatpush2.bf16.msra.mxu0 %v4328_v13  ;;  %v357_v6 = vld [vmem:[#allocation5 + $0x568] sm:$0xff] }
  0x97   :  { %v656_v10 = vld [vmem:[#allocation5 + $0xec0] sm:$0xff]  ;;  %v4321_v15 = vcombine.high %v528_v8, %v532_v9  ;;  %3401 = vmatprep.subr.bf16.mxu1 %v4457_v7  ;;  %v4320_v23 = vcombine.low %v528_v8, %v532_v9  ;;  %v4026_v7 = vcombine.low %v233_v56, %v237_v57  ;;  %v4019_v8 = vcombine.high %v225_v3, %v229_v4  ;;  %v345_v13 = vld [vmem:[#allocation5 + $0x508] sm:$0xff] }
  0x98   :  { %v660_v12 = vld [vmem:[#allocation5 + $0xee0] sm:$0xff]  ;;  %3402 = vmatpush2.bf16.msra.mxu1 %v4456_v14  ;;  %v4147_v9 = vcombine.high %v353_v22, %v357_v6  ;;  %v349_v14 = vld [vmem:[#allocation5 + $0x528] sm:$0xff] }
  0x99   :  { %v4449_v17 = vcombine.high %v656_v10, %v660_v12  ;;  %v520_v18 = vld [vmem:[#allocation5 + $0xa80] sm:$0xff]  ;;  %3362 = vmatprep.subr.bf16.mxu0 %v4321_v15  ;;  %v4448_v24 = vcombine.low %v656_v10, %v660_v12  ;;  %v217_v10 = vld [vmem:[#allocation5 + $0x108] sm:$0xff]  ;;  %v4018_v15 = vcombine.low %v225_v3, %v229_v4 }
  0x9a   :  { %v524_v19 = vld [vmem:[#allocation5 + $0xaa0] sm:$0xff]  ;;  %3363 = vmatpush2.bf16.msra.mxu0 %v4320_v23  ;;  %v221_v12 = vld [vmem:[#allocation5 + $0x128] sm:$0xff] }
  0x9b   :  { %v648_v20 = vld [vmem:[#allocation5 + $0xe80] sm:$0xff]  ;;  %v4313_v26 = vcombine.high %v520_v18, %v524_v19  ;;  %3403 = vmatprep.subr.bf16.mxu1 %v4449_v17  ;;  %v4312_v32 = vcombine.low %v520_v18, %v524_v19  ;;  %v4146_v17 = vcombine.low %v353_v22, %v357_v6  ;;  %v4011_v18 = vcombine.high %v217_v10, %v221_v12  ;;  %v337_v23 = vld [vmem:[#allocation5 + $0x4c8] sm:$0xff] }
  0x9c   :  { %v652_v21 = vld [vmem:[#allocation5 + $0xea0] sm:$0xff]  ;;  %3404 = vmatpush2.bf16.msra.mxu1 %v4448_v24  ;;  %v4139_v19 = vcombine.high %v345_v13, %v349_v14  ;;  %v341_v24 = vld [vmem:[#allocation5 + $0x4e8] sm:$0xff] }
  0x9d   :  { %v4441_v27 = vcombine.high %v648_v20, %v652_v21  ;;  %v512_v28 = vld [vmem:[#allocation5 + $0xa40] sm:$0xff]  ;;  %3364 = vmatprep.subr.bf16.mxu0 %v4313_v26  ;;  %v4440_v34 = vcombine.low %v648_v20, %v652_v21  ;;  %v209_v20 = vld [vmem:[#allocation5 + $0xc8] sm:$0xff]  ;;  %v4010_v26 = vcombine.low %v217_v10, %v221_v12 }
  0x9e   :  { %v516_v29 = vld [vmem:[#allocation5 + $0xa60] sm:$0xff]  ;;  %3365 = vmatpush2.bf16.msra.mxu0 %v4312_v32  ;;  %v213_v21 = vld [vmem:[#allocation5 + $0xe8] sm:$0xff] }
  0x9f   :  { %v640_v30 = vld [vmem:[#allocation5 + $0xe40] sm:$0xff]  ;;  %v4305_v35 = vcombine.high %v512_v28, %v516_v29  ;;  %3405 = vmatprep.subr.bf16.mxu1 %v4441_v27  ;;  %v4304_v42 = vcombine.low %v512_v28, %v516_v29  ;;  %v4138_v27 = vcombine.low %v345_v13, %v349_v14  ;;  %v4003_v28 = vcombine.high %v209_v20, %v213_v21  ;;  %v329_v32 = vld [vmem:[#allocation5 + $0x488] sm:$0xff] }
  0xa0   :  { %v644_v31 = vld [vmem:[#allocation5 + $0xe60] sm:$0xff]  ;;  %3406 = vmatpush2.bf16.msra.mxu1 %v4440_v34  ;;  %v4131_v29 = vcombine.high %v337_v23, %v341_v24  ;;  %v333_v34 = vld [vmem:[#allocation5 + $0x4a8] sm:$0xff] }
  0xa1   :  { %v4433_v36 = vcombine.high %v640_v30, %v644_v31  ;;  %v504_v38 = vld [vmem:[#allocation5 + $0xa00] sm:$0xff]  ;;  %3366 = vmatprep.subr.bf16.mxu0 %v4305_v35  ;;  %v4432_v63 = vcombine.low %v640_v30, %v644_v31  ;;  %v201_v30 = vld [vmem:[#allocation5 + $0x88] sm:$0xff]  ;;  %v4002_v35 = vcombine.low %v209_v20, %v213_v21 }
  0xa2   :  { %v508_v39 = vld [vmem:[#allocation5 + $0xa20] sm:$0xff]  ;;  %3367 = vmatpush2.bf16.msra.mxu0 %v4304_v42  ;;  %v205_v31 = vld [vmem:[#allocation5 + $0xa8] sm:$0xff] }
  0xa3   :  { %v632_v40 = vld [vmem:[#allocation5 + $0xe00] sm:$0xff]  ;;  %v4297_v45 = vcombine.high %v504_v38, %v508_v39  ;;  %3407 = vmatprep.subr.bf16.mxu1 %v4433_v36  ;;  %v4296_v51 = vcombine.low %v504_v38, %v508_v39  ;;  %v4130_v36 = vcombine.low %v337_v23, %v341_v24  ;;  %v3995_v38 = vcombine.high %v201_v30, %v205_v31  ;;  %v321_v42 = vld [vmem:[#allocation5 + $0x448] sm:$0xff] }
  0xa4   :  { %v636_v41 = vld [vmem:[#allocation5 + $0xe20] sm:$0xff]  ;;  %3408 = vmatpush2.bf16.msra.mxu1 %v4432_v63  ;;  %v4123_v39 = vcombine.high %v329_v32, %v333_v34  ;;  %v325_v63 = vld [vmem:[#allocation5 + $0x468] sm:$0xff] }
  0xa5   :  { %v4425_v46 = vcombine.high %v632_v40, %v636_v41  ;;  %3368 = vmatprep.subr.bf16.mxu0 %v4297_v45  ;;  %v4424_v52 = vcombine.low %v632_v40, %v636_v41  ;;  %v193_v40 = vld [vmem:[#allocation5 + $0x48] sm:$0xff]  ;;  %v3994_v45 = vcombine.low %v201_v30, %v205_v31  ;;  %v4115_v48 = vcombine.high %v321_v42, %v325_v63 }
  0xa6   :  { %3369 = vmatpush2.bf16.msra.mxu0 %v4296_v51  ;;  %v197_v41 = vld [vmem:[#allocation5 + $0x68] sm:$0xff] }
  0xa7   :  { %3409 = vmatprep.subr.bf16.mxu1 %v4425_v46  ;;  %3420 = vmatprep.subr.bf16.mxu0 %v4035_v54  ;;  %v4122_v46 = vcombine.low %v329_v32, %v333_v34  ;;  %v3987_v5 = vcombine.high %v193_v40, %v197_v41  ;;  %v185_v49 = vld [vmem:[#allocation5 + $0x8] sm:$0xff]  ;;  %v3986_v54 = vcombine.low %v193_v40, %v197_v41 }
  0xa8   :  { %3410 = vmatpush2.bf16.msra.mxu1 %v4424_v52  ;;  %v189_v50 = vld [vmem:[#allocation5 + $0x28] sm:$0xff] }
  0xa9   :  { %3461 = vmatprep.subr.bf16.mxu1 %v4163_v55  ;;  %3371 = vmatmul.mubr.bf16.vlgmr.msra.gmra.mxu0 %v4668_v58  ;;  %v313_v51 = vld [vmem:[#allocation5 + $0x408] sm:$0xff]  ;;  %v4114_v55 = vcombine.low %v321_v42, %v325_v63  ;;  %v3979_v56 = vcombine.high %v185_v49, %v189_v50 }
  0xaa   :  { %3421 = vmatpush1.bf16.msra.mxu0 %v4034_v62  ;;  %3452 = vmatprep.mubr.bf16.mxu0 %v4632_v11  ;;  %v317_v52 = vld [vmem:[#allocation5 + $0x428] sm:$0xff] }
  0xab   :  { %3412 = vmatmul.mubr.bf16.vlgmr.msra.gmra.mxu1 %v4672_v61  ;;  %3422 = vmatprep.subr.bf16.mxu0 %v4027_v1  ;;  %v4107_v57 = vcombine.high %v313_v51, %v317_v52  ;;  %v305_v59 = vld [vmem:[#allocation5 + $0x3c8] sm:$0xff]  ;;  %v3978_v1 = vcombine.low %v185_v49, %v189_v50 }
  0xac   :  { %3462 = vmatpush1.bf16.msra.mxu1 %v4162_v0  ;;  %3493 = vmatprep.mubr.bf16.mxu1 %v4637_v16  ;;  %v309_v60 = vld [vmem:[#allocation5 + $0x3e8] sm:$0xff] }
  0xad   :  { %3463 = vmatprep.subr.bf16.mxu1 %v4155_v2  ;;  %v433_v62 = vld [vmem:[#allocation5 + $0x7c8] sm:$0xff]  ;;  %v4106_v2 = vcombine.low %v313_v51, %v317_v52  ;;  %v4099_v3 = vcombine.high %v305_v59, %v309_v60 }
  0xae   :  { %3423 = vmatpush1.bf16.msra.mxu0 %v4026_v7  ;;  %v437_v0 = vld [vmem:[#allocation5 + $0x7e8] sm:$0xff] }
  0xaf   :  { %3424 = vmatprep.subr.bf16.mxu0 %v4019_v8  ;;  %v4227_v4 = vcombine.high %v433_v62, %v437_v0  ;;  %v297_v22 = vld [vmem:[#allocation5 + $0x388] sm:$0xff]  ;;  %v4098_v8 = vcombine.low %v305_v59, %v309_v60 }
  0xb0   :  { %3464 = vmatpush1.bf16.msra.mxu1 %v4154_v25  ;;  %v301_v6 = vld [vmem:[#allocation5 + $0x3a8] sm:$0xff] }
  0xb1   :  { %3465 = vmatprep.subr.bf16.mxu1 %v4147_v9  ;;  %v425_v7 = vld [vmem:[#allocation5 + $0x788] sm:$0xff]  ;;  %v4226_v9 = vcombine.low %v433_v62, %v437_v0  ;;  %v4091_v10 = vcombine.high %v297_v22, %v301_v6 }
  0xb2   :  { %3425 = vmatpush1.bf16.msra.mxu0 %v4018_v15  ;;  %v429_v25 = vld [vmem:[#allocation5 + $0x7a8] sm:$0xff] }
  0xb3   :  { %3426 = vmatprep.subr.bf16.mxu0 %v4011_v18  ;;  %v4219_v12 = vcombine.high %v425_v7, %v429_v25  ;;  %v289_v13 = vld [vmem:[#allocation5 + $0x348] sm:$0xff]  ;;  %v4090_v18 = vcombine.low %v297_v22, %v301_v6 }
  0xb4   :  { %3466 = vmatpush1.bf16.msra.mxu1 %v4146_v17  ;;  %v293_v14 = vld [vmem:[#allocation5 + $0x368] sm:$0xff] }
  0xb5   :  { %3467 = vmatprep.subr.bf16.mxu1 %v4139_v19  ;;  %v417_v15 = vld [vmem:[#allocation5 + $0x748] sm:$0xff]  ;;  %v4218_v19 = vcombine.low %v425_v7, %v429_v25  ;;  %v4083_v20 = vcombine.high %v289_v13, %v293_v14 }
  0xb6   :  { %3427 = vmatpush1.bf16.msra.mxu0 %v4010_v26  ;;  %v421_v17 = vld [vmem:[#allocation5 + $0x768] sm:$0xff] }
  0xb7   :  { %3428 = vmatprep.subr.bf16.mxu0 %v4003_v28  ;;  %v4211_v21 = vcombine.high %v417_v15, %v421_v17  ;;  %v281_v23 = vld [vmem:[#allocation5 + $0x308] sm:$0xff]  ;;  %v4082_v28 = vcombine.low %v289_v13, %v293_v14 }
  0xb8   :  { %3468 = vmatpush1.bf16.msra.mxu1 %v4138_v27  ;;  %v285_v24 = vld [vmem:[#allocation5 + $0x328] sm:$0xff] }
  0xb9   :  { %3469 = vmatprep.subr.bf16.mxu1 %v4131_v29  ;;  %v409_v26 = vld [vmem:[#allocation5 + $0x708] sm:$0xff]  ;;  %v4210_v29 = vcombine.low %v417_v15, %v421_v17  ;;  %v4075_v30 = vcombine.high %v281_v23, %v285_v24 }
  0xba   :  { %3429 = vmatpush1.bf16.msra.mxu0 %v4002_v35  ;;  %v413_v27 = vld [vmem:[#allocation5 + $0x728] sm:$0xff] }
  0xbb   :  { %3430 = vmatprep.subr.bf16.mxu0 %v3995_v38  ;;  %v4203_v31 = vcombine.high %v409_v26, %v413_v27  ;;  %v273_v32 = vld [vmem:[#allocation5 + $0x2c8] sm:$0xff]  ;;  %v4074_v38 = vcombine.low %v281_v23, %v285_v24 }
  0xbc   :  { %3470 = vmatpush1.bf16.msra.mxu1 %v4130_v36  ;;  %v277_v34 = vld [vmem:[#allocation5 + $0x2e8] sm:$0xff] }
  0xbd   :  { %3471 = vmatprep.subr.bf16.mxu1 %v4123_v39  ;;  %v401_v35 = vld [vmem:[#allocation5 + $0x6c8] sm:$0xff]  ;;  %v4202_v39 = vcombine.low %v409_v26, %v413_v27  ;;  %v4067_v40 = vcombine.high %v273_v32, %v277_v34 }
  0xbe   :  { %3431 = vmatpush1.bf16.msra.mxu0 %v3994_v45  ;;  %v405_v36 = vld [vmem:[#allocation5 + $0x6e8] sm:$0xff] }
  0xbf   :  { %3432 = vmatprep.subr.bf16.mxu0 %v3987_v5  ;;  %v4195_v41 = vcombine.high %v401_v35, %v405_v36  ;;  %v265_v42 = vld [vmem:[#allocation5 + $0x288] sm:$0xff]  ;;  %v4066_v5 = vcombine.low %v273_v32, %v277_v34 }
  0xc0   :  { %3472 = vmatpush1.bf16.msra.mxu1 %v4122_v46  ;;  %v269_v63 = vld [vmem:[#allocation5 + $0x2a8] sm:$0xff] }
  0xc1   :  { %3473 = vmatprep.subr.bf16.mxu1 %v4115_v48  ;;  %v393_v45 = vld [vmem:[#allocation5 + $0x688] sm:$0xff]  ;;  %v4194_v48 = vcombine.low %v401_v35, %v405_v36  ;;  %v4059_v49 = vcombine.high %v265_v42, %v269_v63 }
  0xc2   :  { %3433 = vmatpush1.bf16.msra.mxu0 %v3986_v54  ;;  %v397_v46 = vld [vmem:[#allocation5 + $0x6a8] sm:$0xff] }
  0xc3   :  { %3434 = vmatprep.subr.bf16.mxu0 %v3979_v56  ;;  %v4187_v50 = vcombine.high %v393_v45, %v397_v46  ;;  %v257_v51 = vld [vmem:[#allocation5 + $0x248] sm:$0xff]  ;;  %v4058_v56 = vcombine.low %v265_v42, %v269_v63 }
  0xc4   :  { %3474 = vmatpush1.bf16.msra.mxu1 %v4114_v55  ;;  %v261_v52 = vld [vmem:[#allocation5 + $0x268] sm:$0xff] }
  0xc5   :  { %3475 = vmatprep.subr.bf16.mxu1 %v4107_v57  ;;  %v385_v54 = vld [vmem:[#allocation5 + $0x648] sm:$0xff]  ;;  %v4186_v57 = vcombine.low %v393_v45, %v397_v46  ;;  %v4051_v59 = vcombine.high %v257_v51, %v261_v52 }
  0xc6   :  { %3435 = vmatpush1.bf16.msra.mxu0 %v3978_v1  ;;  %v389_v55 = vld [vmem:[#allocation5 + $0x668] sm:$0xff] }
  0xc7   :  { %3436 = vmatprep.subr.bf16.mxu0 %v4099_v3  ;;  %v4179_v60 = vcombine.high %v385_v54, %v389_v55  ;;  %v249_v62 = vld [vmem:[#allocation5 + $0x208] sm:$0xff]  ;;  %v4050_v3 = vcombine.low %v257_v51, %v261_v52 }
  0xc8   :  { %3476 = vmatpush1.bf16.msra.mxu1 %v4106_v2  ;;  %v253_v0 = vld [vmem:[#allocation5 + $0x228] sm:$0xff] }
  0xc9   :  { %3477 = vmatprep.subr.bf16.mxu1 %v4227_v4  ;;  %v377_v1 = vld [vmem:[#allocation5 + $0x608] sm:$0xff]  ;;  %v4178_v4 = vcombine.low %v385_v54, %v389_v55  ;;  %v4043_v22 = vcombine.high %v249_v62, %v253_v0 }
  0xca   :  { %3437 = vmatpush2.bf16.msra.mxu0 %v4098_v8  ;;  %v381_v2 = vld [vmem:[#allocation5 + $0x628] sm:$0xff] }
  0xcb   :  { %3438 = vmatprep.subr.bf16.mxu0 %v4091_v10  ;;  %v4171_v6 = vcombine.high %v377_v1, %v381_v2  ;;  %v497_v7 = vld [vmem:[#allocation5 + $0x9c8] sm:$0xff]  ;;  %v4042_v10 = vcombine.low %v249_v62, %v253_v0 }
  0xcc   :  { %3478 = vmatpush2.bf16.msra.mxu1 %v4226_v9  ;;  %v501_v25 = vld [vmem:[#allocation5 + $0x9e8] sm:$0xff] }
  0xcd   :  { %3479 = vmatprep.subr.bf16.mxu1 %v4219_v12  ;;  %v625_v8 = vld [vmem:[#allocation5 + $0xdc8] sm:$0xff]  ;;  %v4170_v12 = vcombine.low %v377_v1, %v381_v2  ;;  %v4291_v13 = vcombine.high %v497_v7, %v501_v25 }
  0xce   :  { %3439 = vmatpush2.bf16.msra.mxu0 %v4090_v18  ;;  %v629_v9 = vld [vmem:[#allocation5 + $0xde8] sm:$0xff] }
  0xcf   :  { %3440 = vmatprep.subr.bf16.mxu0 %v4083_v20  ;;  %v4419_v14 = vcombine.high %v625_v8, %v629_v9  ;;  %v489_v15 = vld [vmem:[#allocation5 + $0x988] sm:$0xff]  ;;  %v4290_v20 = vcombine.low %v497_v7, %v501_v25 }
  0xd0   :  { %3480 = vmatpush2.bf16.msra.mxu1 %v4218_v19  ;;  %v493_v17 = vld [vmem:[#allocation5 + $0x9a8] sm:$0xff] }
  0xd1   :  { %3481 = vmatprep.subr.bf16.mxu1 %v4211_v21  ;;  %v617_v18 = vld [vmem:[#allocation5 + $0xd88] sm:$0xff]  ;;  %v4418_v21 = vcombine.low %v625_v8, %v629_v9  ;;  %v4283_v23 = vcombine.high %v489_v15, %v493_v17 }
  0xd2   :  { %3441 = vmatpush2.bf16.msra.mxu0 %v4082_v28  ;;  %v621_v19 = vld [vmem:[#allocation5 + $0xda8] sm:$0xff] }
  0xd3   :  { %3442 = vmatprep.subr.bf16.mxu0 %v4075_v30  ;;  %v4411_v24 = vcombine.high %v617_v18, %v621_v19  ;;  %v481_v26 = vld [vmem:[#allocation5 + $0x948] sm:$0xff]  ;;  %v4282_v30 = vcombine.low %v489_v15, %v493_v17 }
  0xd4   :  { %3482 = vmatpush2.bf16.msra.mxu1 %v4210_v29  ;;  %v485_v27 = vld [vmem:[#allocation5 + $0x968] sm:$0xff] }
  0xd5   :  { %3483 = vmatprep.subr.bf16.mxu1 %v4203_v31  ;;  %v609_v28 = vld [vmem:[#allocation5 + $0xd48] sm:$0xff]  ;;  %v4410_v31 = vcombine.low %v617_v18, %v621_v19  ;;  %v4275_v32 = vcombine.high %v481_v26, %v485_v27 }
  0xd6   :  { %3443 = vmatpush2.bf16.msra.mxu0 %v4074_v38  ;;  %v613_v29 = vld [vmem:[#allocation5 + $0xd68] sm:$0xff] }
  0xd7   :  { %3444 = vmatprep.subr.bf16.mxu0 %v4067_v40  ;;  %v4403_v34 = vcombine.high %v609_v28, %v613_v29  ;;  %v473_v35 = vld [vmem:[#allocation5 + $0x908] sm:$0xff]  ;;  %v4274_v40 = vcombine.low %v481_v26, %v485_v27 }
  0xd8   :  { %3484 = vmatpush2.bf16.msra.mxu1 %v4202_v39  ;;  %v477_v36 = vld [vmem:[#allocation5 + $0x928] sm:$0xff] }
  0xd9   :  { %3485 = vmatprep.subr.bf16.mxu1 %v4195_v41  ;;  %v601_v38 = vld [vmem:[#allocation5 + $0xd08] sm:$0xff]  ;;  %v4402_v41 = vcombine.low %v609_v28, %v613_v29  ;;  %v4267_v42 = vcombine.high %v473_v35, %v477_v36 }
  0xda   :  { %3445 = vmatpush2.bf16.msra.mxu0 %v4066_v5  ;;  %v605_v39 = vld [vmem:[#allocation5 + $0xd28] sm:$0xff] }
  0xdb   :  { %3446 = vmatprep.subr.bf16.mxu0 %v4059_v49  ;;  %v4395_v63 = vcombine.high %v601_v38, %v605_v39  ;;  %v465_v45 = vld [vmem:[#allocation5 + $0x8c8] sm:$0xff]  ;;  %v4266_v49 = vcombine.low %v473_v35, %v477_v36 }
  0xdc   :  { %3486 = vmatpush2.bf16.msra.mxu1 %v4194_v48  ;;  %v469_v46 = vld [vmem:[#allocation5 + $0x8e8] sm:$0xff] }
  0xdd   :  { %3487 = vmatprep.subr.bf16.mxu1 %v4187_v50  ;;  %v593_v5 = vld [vmem:[#allocation5 + $0xcc8] sm:$0xff]  ;;  %v4394_v50 = vcombine.low %v601_v38, %v605_v39  ;;  %v4259_v51 = vcombine.high %v465_v45, %v469_v46 }
  0xde   :  { %3447 = vmatpush2.bf16.msra.mxu0 %v4058_v56  ;;  %v597_v48 = vld [vmem:[#allocation5 + $0xce8] sm:$0xff] }
  0xdf   :  { %3448 = vmatprep.subr.bf16.mxu0 %v4051_v59  ;;  %v4387_v52 = vcombine.high %v593_v5, %v597_v48  ;;  %v457_v54 = vld [vmem:[#allocation5 + $0x888] sm:$0xff]  ;;  %v4258_v59 = vcombine.low %v465_v45, %v469_v46 }
  0xe0   :  { %3488 = vmatpush2.bf16.msra.mxu1 %v4186_v57  ;;  %v461_v55 = vld [vmem:[#allocation5 + $0x8a8] sm:$0xff] }
  0xe1   :  { %3489 = vmatprep.subr.bf16.mxu1 %v4179_v60  ;;  %v585_v56 = vld [vmem:[#allocation5 + $0xc88] sm:$0xff]  ;;  %v4386_v60 = vcombine.low %v593_v5, %v597_v48  ;;  %v4251_v62 = vcombine.high %v457_v54, %v461_v55 }
  0xe2   :  { %3449 = vmatpush2.bf16.msra.mxu0 %v4050_v3  ;;  %v589_v57 = vld [vmem:[#allocation5 + $0xca8] sm:$0xff] }
  0xe3   :  { %3450 = vmatprep.subr.bf16.mxu0 %v4043_v22  ;;  %v4379_v0 = vcombine.high %v585_v56, %v589_v57  ;;  %v449_v1 = vld [vmem:[#allocation5 + $0x848] sm:$0xff]  ;;  %v4250_v22 = vcombine.low %v457_v54, %v461_v55 }
  0xe4   :  { %3490 = vmatpush2.bf16.msra.mxu1 %v4178_v4  ;;  %v453_v2 = vld [vmem:[#allocation5 + $0x868] sm:$0xff] }
  0xe5   :  { %3491 = vmatprep.subr.bf16.mxu1 %v4171_v6  ;;  %v577_v3 = vld [vmem:[#allocation5 + $0xc48] sm:$0xff]  ;;  %v4378_v6 = vcombine.low %v585_v56, %v589_v57  ;;  %v4243_v7 = vcombine.high %v449_v1, %v453_v2 }
  0xe6   :  { %3451 = vmatpush2.bf16.msra.mxu0 %v4042_v10  ;;  %v581_v4 = vld [vmem:[#allocation5 + $0xc68] sm:$0xff] }
  0xe7   :  { %3502 = vmatprep.subr.bf16.mxu0 %v4291_v13  ;;  %v4371_v25 = vcombine.high %v577_v3, %v581_v4  ;;  %v441_v8 = vld [vmem:[#allocation5 + $0x808] sm:$0xff]  ;;  %v4242_v13 = vcombine.low %v449_v1, %v453_v2 }
  0xe8   :  { %3492 = vmatpush2.bf16.msra.mxu1 %v4170_v12  ;;  %v445_v9 = vld [vmem:[#allocation5 + $0x828] sm:$0xff] }
  0xe9   :  { %3543 = vmatprep.subr.bf16.mxu1 %v4419_v14  ;;  %3453 = vmatmul.mubr.bf16.vlgmr.msra.gmra.mxu0 %v4650_v33  ;;  %v569_v10 = vld [vmem:[#allocation5 + $0xc08] sm:$0xff]  ;;  %v4370_v14 = vcombine.low %v577_v3, %v581_v4  ;;  %v4235_v15 = vcombine.high %v441_v8, %v445_v9 }
  0xea   :  { %3503 = vmatpush1.bf16.msra.mxu0 %v4290_v20  ;;  %3534 = vmatprep.mubr.bf16.mxu0 %v4658_v44  ;;  %v573_v12 = vld [vmem:[#allocation5 + $0xc28] sm:$0xff] }
  0xeb   :  { %3494 = vmatmul.mubr.bf16.vlgmr.msra.gmra.mxu1 %v4656_v37  ;;  %3504 = vmatprep.subr.bf16.mxu0 %v4283_v23  ;;  %v4363_v17 = vcombine.high %v569_v10, %v573_v12  ;;  %v561_v18 = vld [vmem:[#allocation5 + $0xbc8] sm:$0xff]  ;;  %v4234_v23 = vcombine.low %v441_v8, %v445_v9 }
  0xec   :  { %3544 = vmatpush1.bf16.msra.mxu1 %v4418_v21  ;;  %3575 = vmatprep.mubr.bf16.mxu1 %v4661_v47  ;;  %v565_v19 = vld [vmem:[#allocation5 + $0xbe8] sm:$0xff] }
  0xed   :  { %3545 = vmatprep.subr.bf16.mxu1 %v4411_v24  ;;  %v689_v20 = vld [vmem:[#allocation5 + $0xfc8] sm:$0xff]  ;;  %v4362_v24 = vcombine.low %v569_v10, %v573_v12  ;;  %v4355_v26 = vcombine.high %v561_v18, %v565_v19 }
  0xee   :  { %3505 = vmatpush1.bf16.msra.mxu0 %v4282_v30  ;;  %v693_v21 = vld [vmem:[#allocation5 + $0xfe8] sm:$0xff] }
  0xef   :  { %3506 = vmatprep.subr.bf16.mxu0 %v4275_v32  ;;  %v4483_v27 = vcombine.high %v689_v20, %v693_v21  ;;  %v553_v28 = vld [vmem:[#allocation5 + $0xb88] sm:$0xff]  ;;  %v4354_v32 = vcombine.low %v561_v18, %v565_v19 }
  0xf0   :  { %3546 = vmatpush1.bf16.msra.mxu1 %v4410_v31  ;;  %v557_v29 = vld [vmem:[#allocation5 + $0xba8] sm:$0xff] }
  0xf1   :  { %3547 = vmatprep.subr.bf16.mxu1 %v4403_v34  ;;  %v681_v30 = vld [vmem:[#allocation5 + $0xf88] sm:$0xff]  ;;  %v4482_v34 = vcombine.low %v689_v20, %v693_v21  ;;  %v4347_v35 = vcombine.high %v553_v28, %v557_v29 }
  0xf2   :  { %3507 = vmatpush1.bf16.msra.mxu0 %v4274_v40  ;;  %v685_v31 = vld [vmem:[#allocation5 + $0xfa8] sm:$0xff] }
  0xf3   :  { %3508 = vmatprep.subr.bf16.mxu0 %v4267_v42  ;;  %v4475_v36 = vcombine.high %v681_v30, %v685_v31  ;;  %v545_v38 = vld [vmem:[#allocation5 + $0xb48] sm:$0xff]  ;;  %v4346_v42 = vcombine.low %v553_v28, %v557_v29 }
  0xf4   :  { %3548 = vmatpush1.bf16.msra.mxu1 %v4402_v41  ;;  %v549_v39 = vld [vmem:[#allocation5 + $0xb68] sm:$0xff] }
  0xf5   :  { %3549 = vmatprep.subr.bf16.mxu1 %v4395_v63  ;;  %v673_v40 = vld [vmem:[#allocation5 + $0xf48] sm:$0xff]  ;;  %v4474_v63 = vcombine.low %v681_v30, %v685_v31  ;;  %v4339_v45 = vcombine.high %v545_v38, %v549_v39  ;;  %v242_v30 = vld [vmem:[#allocation5 + $0x1d0] sm:$0xff] }
  0xf6   :  { %3509 = vmatpush1.bf16.msra.mxu0 %v4266_v49  ;;  %v677_v41 = vld [vmem:[#allocation5 + $0xf68] sm:$0xff]  ;;  %v246_v31 = vld [vmem:[#allocation5 + $0x1f0] sm:$0xff] }
  0xf7   :  { %3510 = vmatprep.subr.bf16.mxu0 %v4259_v51  ;;  %v4467_v46 = vcombine.high %v673_v40, %v677_v41  ;;  %v537_v5 = vld [vmem:[#allocation5 + $0xb08] sm:$0xff]  ;;  %v4338_v51 = vcombine.low %v545_v38, %v549_v39  ;;  %v4037_v38 = vcombine.high %v242_v30, %v246_v31 }
  0xf8   :  { %3550 = vmatpush1.bf16.msra.mxu1 %v4394_v50  ;;  %v541_v48 = vld [vmem:[#allocation5 + $0xb28] sm:$0xff] }
  0xf9   :  { %3551 = vmatprep.subr.bf16.mxu1 %v4387_v52  ;;  %v665_v49 = vld [vmem:[#allocation5 + $0xf08] sm:$0xff]  ;;  %v4466_v52 = vcombine.low %v673_v40, %v677_v41  ;;  %v4331_v54 = vcombine.high %v537_v5, %v541_v48  ;;  %v234_v40 = vld [vmem:[#allocation5 + $0x190] sm:$0xff] }
  0xfa   :  { %3511 = vmatpush1.bf16.msra.mxu0 %v4258_v59  ;;  %v669_v50 = vld [vmem:[#allocation5 + $0xf28] sm:$0xff]  ;;  %v238_v41 = vld [vmem:[#allocation5 + $0x1b0] sm:$0xff] }
  0xfb   :  { %3512 = vmatprep.subr.bf16.mxu0 %v4251_v62  ;;  %v4459_v55 = vcombine.high %v665_v49, %v669_v50  ;;  %v529_v56 = vld [vmem:[#allocation5 + $0xac8] sm:$0xff]  ;;  %v4330_v62 = vcombine.low %v537_v5, %v541_v48  ;;  %v4029_v5 = vcombine.high %v234_v40, %v238_v41 }
  0xfc   :  { %3552 = vmatpush1.bf16.msra.mxu1 %v4386_v60  ;;  %v533_v57 = vld [vmem:[#allocation5 + $0xae8] sm:$0xff] }
  0xfd   :  { %3553 = vmatprep.subr.bf16.mxu1 %v4379_v0  ;;  %v657_v59 = vld [vmem:[#allocation5 + $0xec8] sm:$0xff]  ;;  %v4458_v0 = vcombine.low %v665_v49, %v669_v50  ;;  %v4323_v1 = vcombine.high %v529_v56, %v533_v57  ;;  %v226_v49 = vld [vmem:[#allocation5 + $0x150] sm:$0xff] }
  0xfe   :  { %3513 = vmatpush1.bf16.msra.mxu0 %v4250_v22  ;;  %v661_v60 = vld [vmem:[#allocation5 + $0xee8] sm:$0xff]  ;;  %v230_v50 = vld [vmem:[#allocation5 + $0x170] sm:$0xff] }
  0xff   :  { %3514 = vmatprep.subr.bf16.mxu0 %v4243_v7  ;;  %v4451_v2 = vcombine.high %v657_v59, %v661_v60  ;;  %v521_v3 = vld [vmem:[#allocation5 + $0xa88] sm:$0xff]  ;;  %v4322_v7 = vcombine.low %v529_v56, %v533_v57  ;;  %v4028_v56 = vcombine.low %v234_v40, %v238_v41 }
 0x100   :  { %3554 = vmatpush1.bf16.msra.mxu1 %v4378_v6  ;;  %v525_v4 = vld [vmem:[#allocation5 + $0xaa8] sm:$0xff] }
 0x101   :  { %3555 = vmatprep.subr.bf16.mxu1 %v4371_v25  ;;  %v649_v22 = vld [vmem:[#allocation5 + $0xe88] sm:$0xff]  ;;  %v4450_v25 = vcombine.low %v657_v59, %v661_v60  ;;  %v4315_v8 = vcombine.high %v521_v3, %v525_v4 }
 0x102   :  { %3515 = vmatpush1.bf16.msra.mxu0 %v4242_v13  ;;  %v653_v6 = vld [vmem:[#allocation5 + $0xea8] sm:$0xff] }
 0x103   :  { %3516 = vmatprep.subr.bf16.mxu0 %v4235_v15  ;;  %v4443_v9 = vcombine.high %v649_v22, %v653_v6  ;;  %v513_v10 = vld [vmem:[#allocation5 + $0xa48] sm:$0xff]  ;;  %v4314_v15 = vcombine.low %v521_v3, %v525_v4  ;;  %v222_v3 = vld [vmem:[#allocation5 + $0x130] sm:$0xff] }
 0x104   :  { %3556 = vmatpush1.bf16.msra.mxu1 %v4370_v14  ;;  %v517_v12 = vld [vmem:[#allocation5 + $0xa68] sm:$0xff] }
 0x105   :  { %3557 = vmatprep.subr.bf16.mxu1 %v4363_v17  ;;  %v641_v13 = vld [vmem:[#allocation5 + $0xe48] sm:$0xff]  ;;  %v4442_v17 = vcombine.low %v649_v22, %v653_v6  ;;  %v4307_v18 = vcombine.high %v513_v10, %v517_v12  ;;  %v346_v6 = vld [vmem:[#allocation5 + $0x510] sm:$0xff] }
 0x106   :  { %3517 = vmatpush1.bf16.msra.mxu0 %v4234_v23  ;;  %v645_v14 = vld [vmem:[#allocation5 + $0xe68] sm:$0xff] }
 0x107   :  { %3518 = vmatprep.subr.bf16.mxu0 %v4355_v26  ;;  %v4435_v19 = vcombine.high %v641_v13, %v645_v14  ;;  %v505_v20 = vld [vmem:[#allocation5 + $0xa08] sm:$0xff]  ;;  %v4306_v26 = vcombine.low %v513_v10, %v517_v12 }
 0x108   :  { %3558 = vmatpush1.bf16.msra.mxu1 %v4362_v24  ;;  %v509_v21 = vld [vmem:[#allocation5 + $0xa28] sm:$0xff] }
 0x109   :  { %3559 = vmatprep.subr.bf16.mxu1 %v4483_v27  ;;  %v633_v23 = vld [vmem:[#allocation5 + $0xe08] sm:$0xff]  ;;  %v4434_v27 = vcombine.low %v641_v13, %v645_v14  ;;  %v4299_v28 = vcombine.high %v505_v20, %v509_v21 }
 0x10a   :  { %3519 = vmatpush2.bf16.msra.mxu0 %v4354_v32  ;;  %v637_v24 = vld [vmem:[#allocation5 + $0xe28] sm:$0xff]  ;;  %v370_v32 = vld [vmem:[#allocation5 + $0x5d0] sm:$0xff] }
 0x10b   :  { %3520 = vmatprep.subr.bf16.mxu0 %v4347_v35  ;;  %v4427_v29 = vcombine.high %v633_v23, %v637_v24  ;;  %v4298_v35 = vcombine.low %v505_v20, %v509_v21 }
 0x10c   :  { %3560 = vmatpush2.bf16.msra.mxu1 %v4482_v34  ;;  %v374_v34 = vld [vmem:[#allocation5 + $0x5f0] sm:$0xff] }
 0x10d   :  { %3561 = vmatprep.subr.bf16.mxu1 %v4475_v36  ;;  %v4426_v36 = vcombine.low %v633_v23, %v637_v24  ;;  %v4165_v39 = vcombine.high %v370_v32, %v374_v34 }
 0x10e   :  { %3521 = vmatpush2.bf16.msra.mxu0 %v4346_v42  ;;  %v362_v42 = vld [vmem:[#allocation5 + $0x590] sm:$0xff] }
 0x10f   :  { %3522 = vmatprep.subr.bf16.mxu0 %v4339_v45  ;;  %v4036_v45 = vcombine.low %v242_v30, %v246_v31 }
 0x110   :  { %3562 = vmatpush2.bf16.msra.mxu1 %v4474_v63  ;;  %v366_v63 = vld [vmem:[#allocation5 + $0x5b0] sm:$0xff] }
 0x111   :  { %3563 = vmatprep.subr.bf16.mxu1 %v4467_v46  ;;  %v4164_v46 = vcombine.low %v370_v32, %v374_v34  ;;  %v4157_v48 = vcombine.high %v362_v42, %v366_v63  ;;  %v4156_v60 = vcombine.low %v362_v42, %v366_v63 }
 0x112   :  { %3523 = vmatpush2.bf16.msra.mxu0 %v4338_v51 }
 0x113   :  { %3524 = vmatprep.subr.bf16.mxu0 %v4331_v54  ;;  %v358_v54 = vld [vmem:[#allocation5 + $0x570] sm:$0xff] }
 0x114   :  { %3564 = vmatpush2.bf16.msra.mxu1 %v4466_v52  ;;  %v354_v52 = vld [vmem:[#allocation5 + $0x550] sm:$0xff] }
 0x115   :  { %3565 = vmatprep.subr.bf16.mxu1 %v4459_v55  ;;  %v4148_v10 = vcombine.low %v354_v52, %v358_v54 }
 0x116   :  { %3525 = vmatpush2.bf16.msra.mxu0 %v4330_v62  ;;  %v4021_v62 = vcombine.high %v226_v49, %v230_v50 }
 0x117   :  { %3526 = vmatprep.subr.bf16.mxu0 %v4323_v1  ;;  %v4149_v1 = vcombine.high %v354_v52, %v358_v54  ;;  %v306_v54 = vld [vmem:[#allocation5 + $0x3d0] sm:$0xff] }
 0x118   :  { %3566 = vmatpush2.bf16.msra.mxu1 %v4458_v0 }
 0x119   :  { %3567 = vmatprep.subr.bf16.mxu1 %v4451_v2  ;;  %v218_v2 = vld [vmem:[#allocation5 + $0x110] sm:$0xff] }
 0x11a   :  { %3527 = vmatpush2.bf16.msra.mxu0 %v4322_v7  ;;  %v350_v7 = vld [vmem:[#allocation5 + $0x530] sm:$0xff]  ;;  %v4013_v12 = vcombine.high %v218_v2, %v222_v3  ;;  %v4012_v20 = vcombine.low %v218_v2, %v222_v3 }
 0x11b   :  { %3528 = vmatprep.subr.bf16.mxu0 %v4315_v8  ;;  %v4020_v8 = vcombine.low %v226_v49, %v230_v50  ;;  %v4141_v14 = vcombine.high %v346_v6, %v350_v7  ;;  %v4140_v21 = vcombine.low %v346_v6, %v350_v7  ;;  %v298_v2 = vld [vmem:[#allocation5 + $0x390] sm:$0xff] }
 0x11c   :  { %3568 = vmatpush2.bf16.msra.mxu1 %v4450_v25  ;;  %v302_v3 = vld [vmem:[#allocation5 + $0x3b0] sm:$0xff] }
 0x11d   :  { %3569 = vmatprep.subr.bf16.mxu1 %v4443_v9  ;;  %v430_v6 = vld [vmem:[#allocation5 + $0x7b0] sm:$0xff] }
 0x11e   :  { %3529 = vmatpush2.bf16.msra.mxu0 %v4314_v15  ;;  %v210_v15 = vld [vmem:[#allocation5 + $0xd0] sm:$0xff] }
 0x11f   :  { %3530 = vmatprep.subr.bf16.mxu0 %v4307_v18  ;;  %v338_v18 = vld [vmem:[#allocation5 + $0x4d0] sm:$0xff] }
 0x120   :  { %3570 = vmatpush2.bf16.msra.mxu1 %v4442_v17  ;;  %v214_v17 = vld [vmem:[#allocation5 + $0xf0] sm:$0xff] }
 0x121   :  { %3571 = vmatprep.subr.bf16.mxu1 %v4435_v19  ;;  %v342_v19 = vld [vmem:[#allocation5 + $0x4f0] sm:$0xff]  ;;  %v4005_v23 = vcombine.high %v210_v15, %v214_v17  ;;  %v4004_v30 = vcombine.low %v210_v15, %v214_v17  ;;  %v4092_v15 = vcombine.low %v298_v2, %v302_v3 }
 0x122   :  { %3531 = vmatpush2.bf16.msra.mxu0 %v4306_v26  ;;  %v4133_v24 = vcombine.high %v338_v18, %v342_v19  ;;  %v202_v26 = vld [vmem:[#allocation5 + $0x90] sm:$0xff]  ;;  %v4132_v31 = vcombine.low %v338_v18, %v342_v19 }
 0x123   :  { %3532 = vmatprep.subr.bf16.mxu0 %v4299_v28  ;;  %v330_v28 = vld [vmem:[#allocation5 + $0x490] sm:$0xff] }
 0x124   :  { %3572 = vmatpush2.bf16.msra.mxu1 %v4434_v27  ;;  %v206_v27 = vld [vmem:[#allocation5 + $0xb0] sm:$0xff] }
 0x125   :  { %3573 = vmatprep.subr.bf16.mxu1 %v4427_v29  ;;  %v334_v29 = vld [vmem:[#allocation5 + $0x4b0] sm:$0xff]  ;;  %v3997_v32 = vcombine.high %v202_v26, %v206_v27  ;;  %v3996_v40 = vcombine.low %v202_v26, %v206_v27 }
 0x126   :  { %3533 = vmatpush2.bf16.msra.mxu0 %v4298_v35  ;;  %v4125_v34 = vcombine.high %v330_v28, %v334_v29  ;;  %v194_v35 = vld [vmem:[#allocation5 + $0x50] sm:$0xff]  ;;  %v4124_v41 = vcombine.low %v330_v28, %v334_v29 }
 0x127   :  { %3584 = vmatprep.subr.bf16.mxu0 %v4037_v38  ;;  %v322_v38 = vld [vmem:[#allocation5 + $0x450] sm:$0xff] }
 0x128   :  { %3574 = vmatpush2.bf16.msra.mxu1 %v4426_v36  ;;  %v198_v36 = vld [vmem:[#allocation5 + $0x70] sm:$0xff] }
 0x129   :  { %3625 = vmatprep.subr.bf16.mxu1 %v4165_v39  ;;  %v3290_v51 = vpop.f32.mrf.mxu0  ;;  %3535 = vmatmul.mubr.bf16.vlgmr.msra.gmra.mxu0 %v4668_v58  ;;  %v326_v39 = vld [vmem:[#allocation5 + $0x470] sm:$0xff]  ;;  %v3989_v42 = vcombine.high %v194_v35, %v198_v36  ;;  %v3988_v49 = vcombine.low %v194_v35, %v198_v36 }
 0x12a   :  { %3585 = vmatpush1.bf16.msra.mxu0 %v4036_v45  ;;  %3616 = vmatprep.mubr.bf16.mxu0 %v4632_v11  ;;  %v4117_v63 = vcombine.high %v322_v38, %v326_v39  ;;  %v186_v45 = vld [vmem:[#allocation5 + $0x10] sm:$0xff]  ;;  %v4116_v50 = vcombine.low %v322_v38, %v326_v39 }
 0x12b   :  { %v3331_v55 = vpop.f32.mrf.mxu1  ;;  %3576 = vmatmul.mubr.bf16.vlgmr.msra.gmra.mxu1 %v4672_v61  ;;  %v3292_v59 = vpop.f32.mrf.mxu0  ;;  %3586 = vmatprep.subr.bf16.mxu0 %v4029_v5  ;;  %v314_v5 = vld [vmem:[#allocation5 + $0x410] sm:$0xff] }
 0x12c   :  { %v4684_v57 = vadd.f32 %v3331_v55, %v3290_v51  ;;  %3626 = vmatpush1.bf16.msra.mxu1 %v4164_v46  ;;  %3657 = vmatprep.mubr.bf16.mxu1 %v4637_v16  ;;  %v190_v46 = vld [vmem:[#allocation5 + $0x30] sm:$0xff] }
 0x12d   :  { %v3333_v0 = vpop.f32.mrf.mxu1  ;;  %3627 = vmatprep.subr.bf16.mxu1 %v4157_v48  ;;  %v3294_v22 = vpop.f32.mrf.mxu0  ;;  %v318_v48 = vld [vmem:[#allocation5 + $0x430] sm:$0xff]  ;;  %v3981_v51 = vcombine.high %v186_v45, %v190_v46 }
 0x12e   :  { %v4687_v4 = vadd.f32 %v3333_v0, %v3292_v59  ;;  %3587 = vmatpush1.bf16.msra.mxu0 %v4028_v56  ;;  %v4109_v52 = vcombine.high %v314_v5, %v318_v48  ;;  %v310_v55 = vld [vmem:[#allocation5 + $0x3f0] sm:$0xff] }
 0x12f   :  { %v3335_v25 = vpop.f32.mrf.mxu1  ;;  %v3295_v9 = vpop.f32.mrf.mxu0  ;;  %3588 = vmatprep.subr.bf16.mxu0 %v4021_v62  ;;  %v434_v56 = vld [vmem:[#allocation5 + $0x7d0] sm:$0xff]  ;;  %v4108_v62 = vcombine.low %v314_v5, %v318_v48  ;;  %v4101_v0 = vcombine.high %v306_v54, %v310_v55  ;;  %v4100_v7 = vcombine.low %v306_v54, %v310_v55 }
 0x130   :  { %3628 = vmatpush1.bf16.msra.mxu1 %v4156_v60  ;;  %v438_v59 = vld [vmem:[#allocation5 + $0x7f0] sm:$0xff]  ;;  %v3980_v60 = vcombine.low %v186_v45, %v190_v46 }
 0x131   :  { %v3336_v13 = vpop.f32.mrf.mxu1  ;;  %3629 = vmatprep.subr.bf16.mxu1 %v4149_v1  ;;  %v4229_v1 = vcombine.high %v434_v56, %v438_v59  ;;  %v426_v22 = vld [vmem:[#allocation5 + $0x790] sm:$0xff]  ;;  %v4228_v25 = vcombine.low %v434_v56, %v438_v59 }
 0x132   :  { %3589 = vmatpush1.bf16.msra.mxu0 %v4020_v8  ;;  %v4093_v8 = vcombine.high %v298_v2, %v302_v3  ;;  %v4221_v9 = vcombine.high %v426_v22, %v430_v6  ;;  %v418_v13 = vld [vmem:[#allocation5 + $0x750] sm:$0xff]  ;;  %v4220_v17 = vcombine.low %v426_v22, %v430_v6 }
 0x133   :  { %3590 = vmatprep.subr.bf16.mxu0 %v4013_v12  ;;  %v294_v12 = vld [vmem:[#allocation5 + $0x370] sm:$0xff] }
 0x134   :  { %3630 = vmatpush1.bf16.msra.mxu1 %v4148_v10  ;;  %v290_v10 = vld [vmem:[#allocation5 + $0x350] sm:$0xff] }
 0x135   :  { %3631 = vmatprep.subr.bf16.mxu1 %v4141_v14  ;;  %v422_v14 = vld [vmem:[#allocation5 + $0x770] sm:$0xff]  ;;  %v4085_v18 = vcombine.high %v290_v10, %v294_v12  ;;  %v4084_v26 = vcombine.low %v290_v10, %v294_v12 }
 0x136   :  { %3591 = vmatpush1.bf16.msra.mxu0 %v4012_v20  ;;  %v4213_v19 = vcombine.high %v418_v13, %v422_v14  ;;  %v282_v20 = vld [vmem:[#allocation5 + $0x310] sm:$0xff]  ;;  %v4212_v27 = vcombine.low %v418_v13, %v422_v14 }
 0x137   :  { %3592 = vmatprep.subr.bf16.mxu0 %v4005_v23  ;;  %v410_v23 = vld [vmem:[#allocation5 + $0x710] sm:$0xff] }
 0x138   :  { %3632 = vmatpush1.bf16.msra.mxu1 %v4140_v21  ;;  %v286_v21 = vld [vmem:[#allocation5 + $0x330] sm:$0xff] }
 0x139   :  { %3633 = vmatprep.subr.bf16.mxu1 %v4133_v24  ;;  %v414_v24 = vld [vmem:[#allocation5 + $0x730] sm:$0xff]  ;;  %v4077_v28 = vcombine.high %v282_v20, %v286_v21  ;;  %v4076_v35 = vcombine.low %v282_v20, %v286_v21 }
 0x13a   :  { %3593 = vmatpush1.bf16.msra.mxu0 %v4004_v30  ;;  %v4205_v29 = vcombine.high %v410_v23, %v414_v24  ;;  %v274_v30 = vld [vmem:[#allocation5 + $0x2d0] sm:$0xff]  ;;  %v4204_v36 = vcombine.low %v410_v23, %v414_v24 }
 0x13b   :  { %3594 = vmatprep.subr.bf16.mxu0 %v3997_v32  ;;  %v402_v32 = vld [vmem:[#allocation5 + $0x6d0] sm:$0xff] }
 0x13c   :  { %3634 = vmatpush1.bf16.msra.mxu1 %v4132_v31  ;;  %v278_v31 = vld [vmem:[#allocation5 + $0x2f0] sm:$0xff] }
 0x13d   :  { %3635 = vmatprep.subr.bf16.mxu1 %v4125_v34  ;;  %v406_v34 = vld [vmem:[#allocation5 + $0x6f0] sm:$0xff]  ;;  %v4069_v38 = vcombine.high %v274_v30, %v278_v31  ;;  %v4068_v45 = vcombine.low %v274_v30, %v278_v31 }
 0x13e   :  { %3595 = vmatpush1.bf16.msra.mxu0 %v3996_v40  ;;  %v4197_v39 = vcombine.high %v402_v32, %v406_v34  ;;  %v266_v40 = vld [vmem:[#allocation5 + $0x290] sm:$0xff]  ;;  %v4196_v46 = vcombine.low %v402_v32, %v406_v34 }
 0x13f   :  { %3596 = vmatprep.subr.bf16.mxu0 %v3989_v42  ;;  %v394_v42 = vld [vmem:[#allocation5 + $0x690] sm:$0xff] }
 0x140   :  { %3636 = vmatpush1.bf16.msra.mxu1 %v4124_v41  ;;  %v270_v41 = vld [vmem:[#allocation5 + $0x2b0] sm:$0xff] }
 0x141   :  { %3637 = vmatprep.subr.bf16.mxu1 %v4117_v63  ;;  %v398_v63 = vld [vmem:[#allocation5 + $0x6b0] sm:$0xff]  ;;  %v4061_v5 = vcombine.high %v266_v40, %v270_v41  ;;  %v4060_v54 = vcombine.low %v266_v40, %v270_v41 }
 0x142   :  { %3597 = vmatpush1.bf16.msra.mxu0 %v3988_v49  ;;  %v4189_v48 = vcombine.high %v394_v42, %v398_v63  ;;  %v258_v49 = vld [vmem:[#allocation5 + $0x250] sm:$0xff]  ;;  %v4188_v55 = vcombine.low %v394_v42, %v398_v63 }
 0x143   :  { %3598 = vmatprep.subr.bf16.mxu0 %v3981_v51  ;;  %v386_v51 = vld [vmem:[#allocation5 + $0x650] sm:$0xff] }
 0x144   :  { %3638 = vmatpush1.bf16.msra.mxu1 %v4116_v50  ;;  %v262_v50 = vld [vmem:[#allocation5 + $0x270] sm:$0xff] }
 0x145   :  { %3639 = vmatprep.subr.bf16.mxu1 %v4109_v52  ;;  %v390_v52 = vld [vmem:[#allocation5 + $0x670] sm:$0xff]  ;;  %v4053_v56 = vcombine.high %v258_v49, %v262_v50  ;;  %v4052_v2 = vcombine.low %v258_v49, %v262_v50 }
 0x146   :  { %3599 = vmatpush1.bf16.msra.mxu0 %v3980_v60  ;;  %v4181_v59 = vcombine.high %v386_v51, %v390_v52  ;;  %v250_v60 = vld [vmem:[#allocation5 + $0x210] sm:$0xff]  ;;  %v4180_v3 = vcombine.low %v386_v51, %v390_v52 }
 0x147   :  { %3600 = vmatprep.subr.bf16.mxu0 %v4101_v0  ;;  %v378_v0 = vld [vmem:[#allocation5 + $0x610] sm:$0xff] }
 0x148   :  { %3640 = vmatpush1.bf16.msra.mxu1 %v4108_v62  ;;  %v254_v62 = vld [vmem:[#allocation5 + $0x230] sm:$0xff] }
 0x149   :  { %3641 = vmatprep.subr.bf16.mxu1 %v4229_v1  ;;  %v382_v1 = vld [vmem:[#allocation5 + $0x630] sm:$0xff]  ;;  %v4045_v22 = vcombine.high %v250_v60, %v254_v62  ;;  %v4044_v10 = vcombine.low %v250_v60, %v254_v62 }
 0x14a   :  { %3601 = vmatpush2.bf16.msra.mxu0 %v4100_v7  ;;  %v4173_v6 = vcombine.high %v378_v0, %v382_v1  ;;  %v498_v7 = vld [vmem:[#allocation5 + $0x9d0] sm:$0xff]  ;;  %v4172_v12 = vcombine.low %v378_v0, %v382_v1 }
 0x14b   :  { %3602 = vmatprep.subr.bf16.mxu0 %v4093_v8  ;;  %v626_v8 = vld [vmem:[#allocation5 + $0xdd0] sm:$0xff] }
 0x14c   :  { %3642 = vmatpush2.bf16.msra.mxu1 %v4228_v25  ;;  %v502_v25 = vld [vmem:[#allocation5 + $0x9f0] sm:$0xff] }
 0x14d   :  { %3643 = vmatprep.subr.bf16.mxu1 %v4221_v9  ;;  %v630_v9 = vld [vmem:[#allocation5 + $0xdf0] sm:$0xff]  ;;  %v4293_v13 = vcombine.high %v498_v7, %v502_v25  ;;  %v4292_v20 = vcombine.low %v498_v7, %v502_v25 }
 0x14e   :  { %3603 = vmatpush2.bf16.msra.mxu0 %v4092_v15  ;;  %v4421_v14 = vcombine.high %v626_v8, %v630_v9  ;;  %v490_v15 = vld [vmem:[#allocation5 + $0x990] sm:$0xff]  ;;  %v4420_v21 = vcombine.low %v626_v8, %v630_v9 }
 0x14f   :  { %3604 = vmatprep.subr.bf16.mxu0 %v4085_v18  ;;  %v618_v18 = vld [vmem:[#allocation5 + $0xd90] sm:$0xff] }
 0x150   :  { %3644 = vmatpush2.bf16.msra.mxu1 %v4220_v17  ;;  %v494_v17 = vld [vmem:[#allocation5 + $0x9b0] sm:$0xff] }
 0x151   :  { %3645 = vmatprep.subr.bf16.mxu1 %v4213_v19  ;;  %v622_v19 = vld [vmem:[#allocation5 + $0xdb0] sm:$0xff]  ;;  %v4285_v23 = vcombine.high %v490_v15, %v494_v17  ;;  %v4284_v34 = vcombine.low %v490_v15, %v494_v17 }
 0x152   :  { %3605 = vmatpush2.bf16.msra.mxu0 %v4084_v26  ;;  %v4413_v24 = vcombine.high %v618_v18, %v622_v19  ;;  %v482_v26 = vld [vmem:[#allocation5 + $0x950] sm:$0xff] }
 0x153   :  { %3606 = vmatprep.subr.bf16.mxu0 %v4077_v28  ;;  %v614_v30 = vld [vmem:[#allocation5 + $0xd70] sm:$0xff] }
 0x154   :  { %3646 = vmatpush2.bf16.msra.mxu1 %v4212_v27  ;;  %v486_v27 = vld [vmem:[#allocation5 + $0x970] sm:$0xff] }
 0x155   :  { %3647 = vmatprep.subr.bf16.mxu1 %v4205_v29  ;;  %v610_v29 = vld [vmem:[#allocation5 + $0xd50] sm:$0xff]  ;;  %v4276_v50 = vcombine.low %v482_v26, %v486_v27 }
 0x156   :  { %3607 = vmatpush2.bf16.msra.mxu0 %v4076_v35  ;;  %v4405_v42 = vcombine.high %v610_v29, %v614_v30  ;;  %v474_v63 = vld [vmem:[#allocation5 + $0x910] sm:$0xff] }
 0x157   :  { %3608 = vmatprep.subr.bf16.mxu0 %v4069_v38  ;;  %v4277_v38 = vcombine.high %v482_v26, %v486_v27  ;;  %v470_v60 = vld [vmem:[#allocation5 + $0x8f0] sm:$0xff] }
 0x158   :  { %3648 = vmatpush2.bf16.msra.mxu1 %v4204_v36  ;;  %v4412_v36 = vcombine.low %v618_v18, %v622_v19  ;;  %v594_v62 = vld [vmem:[#allocation5 + $0xcd0] sm:$0xff] }
 0x159   :  { %3649 = vmatprep.subr.bf16.mxu1 %v4197_v39  ;;  %v598_v0 = vld [vmem:[#allocation5 + $0xcf0] sm:$0xff] }
 0x15a   :  { %3609 = vmatpush2.bf16.msra.mxu0 %v4068_v45  ;;  %v478_v45 = vld [vmem:[#allocation5 + $0x930] sm:$0xff] }
 0x15b   :  { %3610 = vmatprep.subr.bf16.mxu0 %v4061_v5  ;;  %v606_v5 = vld [vmem:[#allocation5 + $0xd30] sm:$0xff]  ;;  %v4269_v52 = vcombine.high %v474_v63, %v478_v45  ;;  %v4268_v1 = vcombine.low %v474_v63, %v478_v45 }
 0x15c   :  { %3650 = vmatpush2.bf16.msra.mxu1 %v4196_v46  ;;  %v602_v46 = vld [vmem:[#allocation5 + $0xd10] sm:$0xff] }
 0x15d   :  { %3651 = vmatprep.subr.bf16.mxu1 %v4189_v48  ;;  %v462_v7 = vld [vmem:[#allocation5 + $0x8b0] sm:$0xff] }
 0x15e   :  { %3611 = vmatpush2.bf16.msra.mxu0 %v4060_v54  ;;  %v586_v25 = vld [vmem:[#allocation5 + $0xc90] sm:$0xff] }
 0x15f   :  { %3612 = vmatprep.subr.bf16.mxu0 %v4053_v56  ;;  %v4397_v56 = vcombine.high %v602_v46, %v606_v5  ;;  %v590_v8 = vld [vmem:[#allocation5 + $0xcb0] sm:$0xff] }
 0x160   :  { %3652 = vmatpush2.bf16.msra.mxu1 %v4188_v55  ;;  %v454_v15 = vld [vmem:[#allocation5 + $0x870] sm:$0xff] }
 0x161   :  { %3653 = vmatprep.subr.bf16.mxu1 %v4181_v59  ;;  %v466_v59 = vld [vmem:[#allocation5 + $0x8d0] sm:$0xff] }
 0x162   :  { %3613 = vmatpush2.bf16.msra.mxu0 %v4052_v2  ;;  %v4396_v2 = vcombine.low %v602_v46, %v606_v5  ;;  %v4260_v9 = vcombine.low %v466_v59, %v470_v60  ;;  %v578_v17 = vld [vmem:[#allocation5 + $0xc50] sm:$0xff] }
 0x163   :  { %3614 = vmatprep.subr.bf16.mxu0 %v4045_v22  ;;  %v4389_v22 = vcombine.high %v594_v62, %v598_v0  ;;  %v582_v18 = vld [vmem:[#allocation5 + $0xc70] sm:$0xff] }
 0x164   :  { %3654 = vmatpush2.bf16.msra.mxu1 %v4180_v3  ;;  %v4261_v3 = vcombine.high %v466_v59, %v470_v60  ;;  %v446_v26 = vld [vmem:[#allocation5 + $0x830] sm:$0xff] }
 0x165   :  { %3655 = vmatprep.subr.bf16.mxu1 %v4173_v6  ;;  %v458_v6 = vld [vmem:[#allocation5 + $0x890] sm:$0xff] }
 0x166   :  { %3615 = vmatpush2.bf16.msra.mxu0 %v4044_v10  ;;  %v4388_v10 = vcombine.low %v594_v62, %v598_v0  ;;  %v4252_v19 = vcombine.low %v458_v6, %v462_v7  ;;  %v570_v27 = vld [vmem:[#allocation5 + $0xc10] sm:$0xff] }
 0x167   :  { %3666 = vmatprep.subr.bf16.mxu0 %v4293_v13  ;;  %v4381_v13 = vcombine.high %v586_v25, %v590_v8  ;;  %v554_v45 = vld [vmem:[#allocation5 + $0xb90] sm:$0xff] }
 0x168   :  { %3656 = vmatpush2.bf16.msra.mxu1 %v4172_v12  ;;  %v4253_v12 = vcombine.high %v458_v6, %v462_v7  ;;  %v682_v46 = vld [vmem:[#allocation5 + $0xf90] sm:$0xff] }
 0x169   :  { %3707 = vmatprep.subr.bf16.mxu1 %v4421_v14  ;;  %v3372_v28 = vpop.f32.mrf.mxu0  ;;  %3617 = vmatmul.mubr.bf16.vlgmr.msra.gmra.mxu0 %v4650_v33  ;;  %v450_v14 = vld [vmem:[#allocation5 + $0x850] sm:$0xff] }
 0x16a   :  { %v3373_v31 = vadd.f32 %v3372_v28, %v4684_v57  ;;  %3667 = vmatpush1.bf16.msra.mxu0 %v4292_v20  ;;  %3698 = vmatprep.mubr.bf16.mxu0 %v4658_v44  ;;  %v4380_v20 = vcombine.low %v586_v25, %v590_v8  ;;  %v574_v28 = vld [vmem:[#allocation5 + $0xc30] sm:$0xff] }
 0x16b   :  { %v3413_v32 = vpop.f32.mrf.mxu1  ;;  %3658 = vmatmul.mubr.bf16.vlgmr.msra.gmra.mxu1 %v4656_v37  ;;  %v3374_v35 = vpop.f32.mrf.mxu0  ;;  %3668 = vmatprep.subr.bf16.mxu0 %v4285_v23  ;;  %v4373_v23 = vcombine.high %v578_v17, %v582_v18  ;;  %v686_v5 = vld [vmem:[#allocation5 + $0xfb0] sm:$0xff] }
 0x16c   :  { %3708 = vmatpush1.bf16.msra.mxu1 %v4420_v21  ;;  %v4693_v39 = vadd.f32 %v3413_v32, %v3373_v31  ;;  %v3375_v40 = vadd.f32 %v3374_v35, %v4687_v4  ;;  %3739 = vmatprep.mubr.bf16.mxu1 %v4661_v47  ;;  %v4404_v4 = vcombine.low %v610_v29, %v614_v30  ;;  %v566_v35 = vld [vmem:[#allocation5 + $0xbf0] sm:$0xff] }
 0x16d   :  { %v3415_v41 = vpop.f32.mrf.mxu1  ;;  %3709 = vmatprep.subr.bf16.mxu1 %v4413_v24  ;;  %v3376_v57 = vpop.f32.mrf.mxu0  ;;  %v4245_v21 = vcombine.high %v450_v14, %v454_v15  ;;  %v442_v24 = vld [vmem:[#allocation5 + $0x810] sm:$0xff]  ;;  %v4244_v29 = vcombine.low %v450_v14, %v454_v15  ;;  %v4372_v30 = vcombine.low %v578_v17, %v582_v18  ;;  %v4365_v32 = vcombine.high %v570_v27, %v574_v28 }
 0x16e   :  { %v4698_v48 = vadd.f32 %v3415_v41, %v3375_v40  ;;  %3669 = vmatpush1.bf16.msra.mxu0 %v4284_v34  ;;  %v4237_v31 = vcombine.high %v442_v24, %v446_v26  ;;  %v562_v34 = vld [vmem:[#allocation5 + $0xbd0] sm:$0xff]  ;;  %v4236_v40 = vcombine.low %v442_v24, %v446_v26  ;;  %v4364_v41 = vcombine.low %v570_v27, %v574_v28 }
 0x16f   :  { %v3417_v49 = vpop.f32.mrf.mxu1  ;;  %v3377_v51 = vpop.f32.mrf.mxu0  ;;  %3670 = vmatprep.subr.bf16.mxu0 %v4277_v38  ;;  %v694_v38 = vld [vmem:[#allocation5 + $0xff0] sm:$0xff]  ;;  %v4476_v62 = vcombine.low %v682_v46, %v686_v5 }
 0x170   :  { %3710 = vmatpush1.bf16.msra.mxu1 %v4412_v36  ;;  %v3920_v54 = vcombine.low %v4693_v39, %v4698_v48  ;;  %v690_v36 = vld [vmem:[#allocation5 + $0xfd0] sm:$0xff]  ;;  %v4356_v49 = vcombine.low %v562_v34, %v566_v35 }
 0x171   :  { %v3418_v55 = vpop.f32.mrf.mxu1  ;;  %3711 = vmatprep.subr.bf16.mxu1 %v4405_v42  ;;  %v4357_v42 = vcombine.high %v562_v34, %v566_v35  ;;  %v4485_v63 = vcombine.high %v690_v36, %v694_v38  ;;  %v558_v57 = vld [vmem:[#allocation5 + $0xbb0] sm:$0xff] }
 0x172   :  { %3671 = vmatpush1.bf16.msra.mxu0 %v4276_v50  ;;  %v4484_v50 = vcombine.low %v690_v36, %v694_v38  ;;  %v4349_v51 = vcombine.high %v554_v45, %v558_v57  ;;  %v550_v55 = vld [vmem:[#allocation5 + $0xb70] sm:$0xff]  ;;  %v4348_v60 = vcombine.low %v554_v45, %v558_v57 }
 0x173   :  { %3672 = vmatprep.subr.bf16.mxu0 %v4269_v52  ;;  %v546_v52 = vld [vmem:[#allocation5 + $0xb50] sm:$0xff] }
 0x174   :  { %3712 = vmatpush1.bf16.msra.mxu1 %v4404_v4  ;;  %v4477_v4 = vcombine.high %v682_v46, %v686_v5  ;;  %v678_v59 = vld [vmem:[#allocation5 + $0xf70] sm:$0xff]  ;;  %v4341_v0 = vcombine.high %v546_v52, %v550_v55  ;;  %v4340_v7 = vcombine.low %v546_v52, %v550_v55  ;;  %v375_v52 = vld [vmem:[#allocation5 + $0x5f8] sm:$0xff] }
 0x175   :  { %3713 = vmatprep.subr.bf16.mxu1 %v4397_v56  ;;  %v674_v56 = vld [vmem:[#allocation5 + $0xf50] sm:$0xff] }
 0x176   :  { %3673 = vmatpush1.bf16.msra.mxu0 %v4268_v1  ;;  %v4469_v1 = vcombine.high %v674_v56, %v678_v59  ;;  %v670_v6 = vld [vmem:[#allocation5 + $0xf30] sm:$0xff]  ;;  %v4468_v25 = vcombine.low %v674_v56, %v678_v59 }
 0x177   :  { %3674 = vmatprep.subr.bf16.mxu0 %v4261_v3  ;;  %v542_v3 = vld [vmem:[#allocation5 + $0xb30] sm:$0xff] }
 0x178   :  { %3714 = vmatpush1.bf16.msra.mxu1 %v4396_v2  ;;  %v538_v2 = vld [vmem:[#allocation5 + $0xb10] sm:$0xff] }
 0x179   :  { %3715 = vmatprep.subr.bf16.mxu1 %v4389_v22  ;;  %v666_v22 = vld [vmem:[#allocation5 + $0xf10] sm:$0xff]  ;;  %v4333_v8 = vcombine.high %v538_v2, %v542_v3  ;;  %v4332_v15 = vcombine.low %v538_v2, %v542_v3  ;;  %v367_v2 = vld [vmem:[#allocation5 + $0x5b8] sm:$0xff] }
 0x17a   :  { %3675 = vmatpush1.bf16.msra.mxu0 %v4260_v9  ;;  %v4461_v9 = vcombine.high %v666_v22, %v670_v6  ;;  %v662_v14 = vld [vmem:[#allocation5 + $0xef0] sm:$0xff]  ;;  %v4460_v17 = vcombine.low %v666_v22, %v670_v6 }
 0x17b   :  { %3676 = vmatprep.subr.bf16.mxu0 %v4253_v12  ;;  %v534_v12 = vld [vmem:[#allocation5 + $0xaf0] sm:$0xff] }
 0x17c   :  { %3716 = vmatpush1.bf16.msra.mxu1 %v4388_v10  ;;  %v530_v10 = vld [vmem:[#allocation5 + $0xad0] sm:$0xff] }
 0x17d   :  { %3717 = vmatprep.subr.bf16.mxu1 %v4381_v13  ;;  %v658_v13 = vld [vmem:[#allocation5 + $0xed0] sm:$0xff]  ;;  %v4325_v18 = vcombine.high %v530_v10, %v534_v12  ;;  %v4324_v26 = vcombine.low %v530_v10, %v534_v12  ;;  %v355_v10 = vld [vmem:[#allocation5 + $0x558] sm:$0xff] }
 0x17e   :  { %3677 = vmatpush1.bf16.msra.mxu0 %v4252_v19  ;;  %v4453_v19 = vcombine.high %v658_v13, %v662_v14  ;;  %v654_v24 = vld [vmem:[#allocation5 + $0xeb0] sm:$0xff]  ;;  %v4452_v27 = vcombine.low %v658_v13, %v662_v14  ;;  %v359_v12 = vld [vmem:[#allocation5 + $0x578] sm:$0xff] }
 0x17f   :  { %3678 = vmatprep.subr.bf16.mxu0 %v4245_v21  ;;  %v526_v21 = vld [vmem:[#allocation5 + $0xab0] sm:$0xff] }
 0x180   :  { %3718 = vmatpush1.bf16.msra.mxu1 %v4380_v20  ;;  %v522_v20 = vld [vmem:[#allocation5 + $0xa90] sm:$0xff] }
 0x181   :  { %3719 = vmatprep.subr.bf16.mxu1 %v4373_v23  ;;  %v650_v23 = vld [vmem:[#allocation5 + $0xe90] sm:$0xff]  ;;  %v4317_v28 = vcombine.high %v522_v20, %v526_v21  ;;  %v4316_v35 = vcombine.low %v522_v20, %v526_v21  ;;  %v4151_v20 = vcombine.high %v355_v10, %v359_v12  ;;  %v219_v21 = vld [vmem:[#allocation5 + $0x118] sm:$0xff] }
 0x182   :  { %3679 = vmatpush1.bf16.msra.mxu0 %v4244_v29  ;;  %v4445_v29 = vcombine.high %v650_v23, %v654_v24  ;;  %v646_v34 = vld [vmem:[#allocation5 + $0xe70] sm:$0xff]  ;;  %v4444_v36 = vcombine.low %v650_v23, %v654_v24  ;;  %v223_v23 = vld [vmem:[#allocation5 + $0x138] sm:$0xff] }
 0x183   :  { %3680 = vmatprep.subr.bf16.mxu0 %v4237_v31  ;;  %v518_v31 = vld [vmem:[#allocation5 + $0xa70] sm:$0xff] }
 0x184   :  { %3720 = vmatpush1.bf16.msra.mxu1 %v4372_v30  ;;  %v514_v30 = vld [vmem:[#allocation5 + $0xa50] sm:$0xff] }
 0x185   :  { %3721 = vmatprep.subr.bf16.mxu1 %v4365_v32  ;;  %v642_v32 = vld [vmem:[#allocation5 + $0xe50] sm:$0xff]  ;;  %v4309_v38 = vcombine.high %v514_v30, %v518_v31  ;;  %v4308_v57 = vcombine.low %v514_v30, %v518_v31  ;;  %v4150_v31 = vcombine.low %v355_v10, %v359_v12  ;;  %v307_v12 = vld [vmem:[#allocation5 + $0x3d8] sm:$0xff] }
 0x186   :  { %3681 = vmatpush1.bf16.msra.mxu0 %v4236_v40  ;;  %v4437_v40 = vcombine.high %v642_v32, %v646_v34  ;;  %v638_v45 = vld [vmem:[#allocation5 + $0xe30] sm:$0xff]  ;;  %v4436_v46 = vcombine.low %v642_v32, %v646_v34  ;;  %v4015_v32 = vcombine.high %v219_v21, %v223_v23 }
 0x187   :  { %3682 = vmatprep.subr.bf16.mxu0 %v4357_v42  ;;  %v510_v42 = vld [vmem:[#allocation5 + $0xa30] sm:$0xff] }
 0x188   :  { %3722 = vmatpush1.bf16.msra.mxu1 %v4364_v41  ;;  %v506_v41 = vld [vmem:[#allocation5 + $0xa10] sm:$0xff] }
 0x189   :  { %3723 = vmatprep.subr.bf16.mxu1 %v4485_v63  ;;  %v634_v63 = vld [vmem:[#allocation5 + $0xe10] sm:$0xff]  ;;  %v4301_v5 = vcombine.high %v506_v41, %v510_v42  ;;  %v4300_v55 = vcombine.low %v506_v41, %v510_v42  ;;  %v4014_v41 = vcombine.low %v219_v21, %v223_v23 }
 0x18a   :  { %3683 = vmatpush2.bf16.msra.mxu0 %v4356_v49  ;;  %v4429_v49 = vcombine.high %v634_v63, %v638_v45  ;;  %v4428_v56 = vcombine.low %v634_v63, %v638_v45  ;;  %v203_v45 = vld [vmem:[#allocation5 + $0x98] sm:$0xff] }
 0x18b   :  { %3684 = vmatprep.subr.bf16.mxu0 %v4349_v51  ;;  %v247_v51 = vld [vmem:[#allocation5 + $0x1f8] sm:$0xff] }
 0x18c   :  { %3724 = vmatpush2.bf16.msra.mxu1 %v4484_v50  ;;  %v243_v50 = vld [vmem:[#allocation5 + $0x1d8] sm:$0xff] }
 0x18d   :  { %3725 = vmatprep.subr.bf16.mxu1 %v4477_v4  ;;  %v371_v4 = vld [vmem:[#allocation5 + $0x5d8] sm:$0xff]  ;;  %v4039_v59 = vcombine.high %v243_v50, %v247_v51  ;;  %v4038_v3 = vcombine.low %v243_v50, %v247_v51 }
 0x18e   :  { %3685 = vmatpush2.bf16.msra.mxu0 %v4348_v60  ;;  %v4167_v60 = vcombine.high %v371_v4, %v375_v52  ;;  %v4166_v22 = vcombine.low %v371_v4, %v375_v52  ;;  %v195_v52 = vld [vmem:[#allocation5 + $0x58] sm:$0xff] }
 0x18f   :  { %3686 = vmatprep.subr.bf16.mxu0 %v4341_v0  ;;  %v239_v0 = vld [vmem:[#allocation5 + $0x1b8] sm:$0xff] }
 0x190   :  { %3726 = vmatpush2.bf16.msra.mxu1 %v4476_v62  ;;  %v235_v62 = vld [vmem:[#allocation5 + $0x198] sm:$0xff] }
 0x191   :  { %3727 = vmatprep.subr.bf16.mxu1 %v4469_v1  ;;  %v363_v1 = vld [vmem:[#allocation5 + $0x598] sm:$0xff]  ;;  %v4031_v6 = vcombine.high %v235_v62, %v239_v0  ;;  %v4030_v14 = vcombine.low %v235_v62, %v239_v0 }
 0x192   :  { %3687 = vmatpush2.bf16.msra.mxu0 %v4340_v7  ;;  %v4159_v7 = vcombine.high %v363_v1, %v367_v2 }
 0x193   :  { %3688 = vmatprep.subr.bf16.mxu0 %v4333_v8  ;;  %v231_v8 = vld [vmem:[#allocation5 + $0x178] sm:$0xff] }
 0x194   :  { %3728 = vmatpush2.bf16.msra.mxu1 %v4468_v25  ;;  %v227_v25 = vld [vmem:[#allocation5 + $0x158] sm:$0xff] }
 0x195   :  { %3729 = vmatprep.subr.bf16.mxu1 %v4461_v9 }
 0x196   :  { %3689 = vmatpush2.bf16.msra.mxu0 %v4332_v15 }
 0x197   :  { %3690 = vmatprep.subr.bf16.mxu0 %v4325_v18  ;;  %v4023_v18 = vcombine.high %v227_v25, %v231_v8 }
 0x198   :  { %3730 = vmatpush2.bf16.msra.mxu1 %v4460_v17  ;;  %v4158_v17 = vcombine.low %v363_v1, %v367_v2  ;;  %v187_v2 = vld [vmem:[#allocation5 + $0x18] sm:$0xff] }
 0x199   :  { %3731 = vmatprep.subr.bf16.mxu1 %v4453_v19 }
 0x19a   :  { %3691 = vmatpush2.bf16.msra.mxu0 %v4324_v26  ;;  %v347_v26 = vld [vmem:[#allocation5 + $0x518] sm:$0xff] }
 0x19b   :  { %3692 = vmatprep.subr.bf16.mxu0 %v4317_v28 }
 0x19c   :  { %3732 = vmatpush2.bf16.msra.mxu1 %v4452_v27  ;;  %v351_v27 = vld [vmem:[#allocation5 + $0x538] sm:$0xff] }
 0x19d   :  { %3733 = vmatprep.subr.bf16.mxu1 %v4445_v29  ;;  %v4022_v29 = vcombine.low %v227_v25, %v231_v8 }
 0x19e   :  { %3693 = vmatpush2.bf16.msra.mxu0 %v4316_v35  ;;  %v4143_v35 = vcombine.high %v347_v26, %v351_v27 }
 0x19f   :  { %3694 = vmatprep.subr.bf16.mxu0 %v4309_v38  ;;  %v215_v38 = vld [vmem:[#allocation5 + $0xf8] sm:$0xff] }
 0x1a0   :  { %3734 = vmatpush2.bf16.msra.mxu1 %v4444_v36  ;;  %v211_v36 = vld [vmem:[#allocation5 + $0xd8] sm:$0xff] }
 0x1a1   :  { %3735 = vmatprep.subr.bf16.mxu1 %v4437_v40  ;;  %v339_v40 = vld [vmem:[#allocation5 + $0x4d8] sm:$0xff]  ;;  %v4007_v42 = vcombine.high %v211_v36, %v215_v38 }
 0x1a2   :  { %3695 = vmatpush2.bf16.msra.mxu0 %v4308_v57  ;;  %v207_v57 = vld [vmem:[#allocation5 + $0xb8] sm:$0xff] }
 0x1a3   :  { %3696 = vmatprep.subr.bf16.mxu0 %v4301_v5  ;;  %v335_v5 = vld [vmem:[#allocation5 + $0x4b8] sm:$0xff]  ;;  %v3999_v51 = vcombine.high %v203_v45, %v207_v57 }
 0x1a4   :  { %3736 = vmatpush2.bf16.msra.mxu1 %v4436_v46  ;;  %v331_v46 = vld [vmem:[#allocation5 + $0x498] sm:$0xff] }
 0x1a5   :  { %3737 = vmatprep.subr.bf16.mxu1 %v4429_v49  ;;  %v4006_v49 = vcombine.low %v211_v36, %v215_v38  ;;  %v4127_v4 = vcombine.high %v331_v46, %v335_v5  ;;  %v4126_v62 = vcombine.low %v331_v46, %v335_v5  ;;  %v295_v36 = vld [vmem:[#allocation5 + $0x378] sm:$0xff] }
 0x1a6   :  { %3697 = vmatpush2.bf16.msra.mxu0 %v4300_v55  ;;  %v199_v55 = vld [vmem:[#allocation5 + $0x78] sm:$0xff] }
 0x1a7   :  { %3748 = vmatprep.subr.bf16.mxu0 %v4039_v59  ;;  %v327_v59 = vld [vmem:[#allocation5 + $0x478] sm:$0xff]  ;;  %v3991_v0 = vcombine.high %v195_v52, %v199_v55 }
 0x1a8   :  { %3738 = vmatpush2.bf16.msra.mxu1 %v4428_v56  ;;  %v323_v56 = vld [vmem:[#allocation5 + $0x458] sm:$0xff] }
 0x1a9   :  { %3789 = vmatprep.subr.bf16.mxu1 %v4167_v60  ;;  %v4702_v9 = vpop.f32.mrf.mxu0  ;;  %3699 = vmatmul.mubr.bf16.vlgmr.msra.gmra.mxu0 %v4668_v58  ;;  %v3998_v60 = vcombine.low %v203_v45, %v207_v57  ;;  %v4119_v1 = vcombine.high %v323_v56, %v327_v59  ;;  %v4118_v25 = vcombine.low %v323_v56, %v327_v59  ;;  %v419_v38 = vld [vmem:[#allocation5 + $0x758] sm:$0xff] }
 0x1aa   :  { %3749 = vmatpush1.bf16.msra.mxu0 %v4038_v3  ;;  %3780 = vmatprep.mubr.bf16.mxu0 %v4632_v11  ;;  %v343_v11 = vld [vmem:[#allocation5 + $0x4f8] sm:$0xff] }
 0x1ab   :  { %v4705_v13 = vpop.f32.mrf.mxu1  ;;  %3740 = vmatmul.mubr.bf16.vlgmr.msra.gmra.mxu1 %v4672_v61  ;;  %v4708_v15 = vpop.f32.mrf.mxu0  ;;  %3750 = vmatprep.subr.bf16.mxu0 %v4031_v6  ;;  %v4135_v63 = vcombine.high %v339_v40, %v343_v11  ;;  %v4134_v50 = vcombine.low %v339_v40, %v343_v11  ;;  %v191_v3 = vld [vmem:[#allocation5 + $0x38] sm:$0xff] }
 0x1ac   :  { %3790 = vmatpush1.bf16.msra.mxu1 %v4166_v22  ;;  %3821 = vmatprep.mubr.bf16.mxu1 %v4637_v16  ;;  %v4142_v16 = vcombine.low %v347_v26, %v351_v27  ;;  %v315_v22 = vld [vmem:[#allocation5 + $0x418] sm:$0xff]  ;;  %v3983_v8 = vcombine.high %v187_v2, %v191_v3 }
 0x1ad   :  { %v4710_v19 = vpop.f32.mrf.mxu1  ;;  %3791 = vmatprep.subr.bf16.mxu1 %v4159_v7  ;;  %v3458_v24 = vpop.f32.mrf.mxu0  ;;  %v319_v6 = vld [vmem:[#allocation5 + $0x438] sm:$0xff]  ;;  %v3990_v7 = vcombine.low %v195_v52, %v199_v55 }
 0x1ae   :  { %3751 = vmatpush1.bf16.msra.mxu0 %v4030_v14  ;;  %v4111_v10 = vcombine.high %v315_v22, %v319_v6  ;;  %v311_v14 = vld [vmem:[#allocation5 + $0x3f8] sm:$0xff]  ;;  %v4110_v21 = vcombine.low %v315_v22, %v319_v6 }
 0x1af   :  { %v3499_v28 = vpop.f32.mrf.mxu1  ;;  %v3459_v30 = vpop.f32.mrf.mxu0  ;;  %3752 = vmatprep.subr.bf16.mxu0 %v4023_v18  ;;  %v439_v18 = vld [vmem:[#allocation5 + $0x7f8] sm:$0xff]  ;;  %v4103_v23 = vcombine.high %v307_v12, %v311_v14 }
 0x1b0   :  { %3792 = vmatpush1.bf16.msra.mxu1 %v4158_v17  ;;  %v435_v17 = vld [vmem:[#allocation5 + $0x7d8] sm:$0xff]  ;;  %v4102_v30 = vcombine.low %v307_v12, %v311_v14 }
 0x1b1   :  { %v3500_v34 = vpop.f32.mrf.mxu1  ;;  %3793 = vmatprep.subr.bf16.mxu1 %v4151_v20  ;;  %v3982_v20 = vcombine.low %v187_v2, %v191_v3  ;;  %v4231_v24 = vcombine.high %v435_v17, %v439_v18  ;;  %v299_v26 = vld [vmem:[#allocation5 + $0x398] sm:$0xff] }
 0x1b2   :  { %3753 = vmatpush1.bf16.msra.mxu0 %v4022_v29  ;;  %v303_v27 = vld [vmem:[#allocation5 + $0x3b8] sm:$0xff] }
 0x1b3   :  { %3754 = vmatprep.subr.bf16.mxu0 %v4015_v32  ;;  %v427_v28 = vld [vmem:[#allocation5 + $0x798] sm:$0xff]  ;;  %v4095_v32 = vcombine.high %v299_v26, %v303_v27  ;;  %v4094_v11 = vcombine.low %v299_v26, %v303_v27 }
 0x1b4   :  { %3794 = vmatpush1.bf16.msra.mxu1 %v4150_v31  ;;  %v431_v29 = vld [vmem:[#allocation5 + $0x7b8] sm:$0xff]  ;;  %v4230_v31 = vcombine.low %v435_v17, %v439_v18 }
 0x1b5   :  { %3795 = vmatprep.subr.bf16.mxu1 %v4143_v35  ;;  %v4223_v34 = vcombine.high %v427_v28, %v431_v29  ;;  %v291_v35 = vld [vmem:[#allocation5 + $0x358] sm:$0xff] }
 0x1b6   :  { %3755 = vmatpush1.bf16.msra.mxu0 %v4014_v41  ;;  %v423_v40 = vld [vmem:[#allocation5 + $0x778] sm:$0xff]  ;;  %v4222_v41 = vcombine.low %v427_v28, %v431_v29  ;;  %v4086_v5 = vcombine.low %v291_v35, %v295_v36 }
 0x1b7   :  { %3756 = vmatprep.subr.bf16.mxu0 %v4007_v42  ;;  %v4215_v42 = vcombine.high %v419_v38, %v423_v40  ;;  %v287_v45 = vld [vmem:[#allocation5 + $0x338] sm:$0xff] }
 0x1b8   :  { %3796 = vmatpush1.bf16.msra.mxu1 %v4142_v16  ;;  %v4087_v16 = vcombine.high %v291_v35, %v295_v36  ;;  %v411_v57 = vld [vmem:[#allocation5 + $0x718] sm:$0xff] }
 0x1b9   :  { %3797 = vmatprep.subr.bf16.mxu1 %v4135_v63  ;;  %v283_v63 = vld [vmem:[#allocation5 + $0x318] sm:$0xff] }
 0x1ba   :  { %3757 = vmatpush1.bf16.msra.mxu0 %v4006_v49  ;;  %v415_v46 = vld [vmem:[#allocation5 + $0x738] sm:$0xff]  ;;  %v4214_v49 = vcombine.low %v419_v38, %v423_v40  ;;  %v4078_v59 = vcombine.low %v283_v63, %v287_v45  ;;  %v60_v40 = vsub.s32 0, %v4619_v43 }
 0x1bb   :  { %3758 = vmatprep.subr.bf16.mxu0 %v3999_v51  ;;  %v4207_v51 = vcombine.high %v411_v57, %v415_v46  ;;  %v279_v52 = vld [vmem:[#allocation5 + $0x2f8] sm:$0xff] }
 0x1bc   :  { %3798 = vmatpush1.bf16.msra.mxu1 %v4134_v50  ;;  %v4079_v50 = vcombine.high %v283_v63, %v287_v45  ;;  %v403_v55 = vld [vmem:[#allocation5 + $0x6d8] sm:$0xff]  ;;  %v72_v63 = vsub.s32 3, %v4619_v43 }
 0x1bd   :  { %3799 = vmatprep.subr.bf16.mxu1 %v4127_v4  ;;  %v275_v4 = vld [vmem:[#allocation5 + $0x2d8] sm:$0xff] }
 0x1be   :  { %3759 = vmatpush1.bf16.msra.mxu0 %v3998_v60  ;;  %v407_v56 = vld [vmem:[#allocation5 + $0x6f8] sm:$0xff]  ;;  %v4206_v60 = vcombine.low %v411_v57, %v415_v46  ;;  %v4070_v6 = vcombine.low %v275_v4, %v279_v52 }
 0x1bf   :  { %3760 = vmatprep.subr.bf16.mxu0 %v3991_v0  ;;  %v4199_v0 = vcombine.high %v403_v55, %v407_v56  ;;  %v271_v2 = vld [vmem:[#allocation5 + $0x2b8] sm:$0xff] }
 0x1c0   :  { %3800 = vmatpush1.bf16.msra.mxu1 %v4126_v62  ;;  %v4071_v62 = vcombine.high %v275_v4, %v279_v52  ;;  %v395_v3 = vld [vmem:[#allocation5 + $0x698] sm:$0xff] }
 0x1c1   :  { %3801 = vmatprep.subr.bf16.mxu1 %v4119_v1  ;;  %v267_v1 = vld [vmem:[#allocation5 + $0x298] sm:$0xff] }
 0x1c2   :  { %3761 = vmatpush1.bf16.msra.mxu0 %v3990_v7  ;;  %v399_v22 = vld [vmem:[#allocation5 + $0x6b8] sm:$0xff]  ;;  %v4198_v7 = vcombine.low %v403_v55, %v407_v56  ;;  %v4062_v18 = vcombine.low %v267_v1, %v271_v2 }
 0x1c3   :  { %3762 = vmatprep.subr.bf16.mxu0 %v3983_v8  ;;  %v4191_v8 = vcombine.high %v395_v3, %v399_v22  ;;  %v263_v12 = vld [vmem:[#allocation5 + $0x278] sm:$0xff] }
 0x1c4   :  { %3802 = vmatpush1.bf16.msra.mxu1 %v4118_v25  ;;  %v4063_v25 = vcombine.high %v267_v1, %v271_v2  ;;  %v387_v14 = vld [vmem:[#allocation5 + $0x658] sm:$0xff] }
 0x1c5   :  { %3803 = vmatprep.subr.bf16.mxu1 %v4111_v10  ;;  %v259_v10 = vld [vmem:[#allocation5 + $0x258] sm:$0xff] }
 0x1c6   :  { %3763 = vmatpush1.bf16.msra.mxu0 %v3982_v20  ;;  %v391_v17 = vld [vmem:[#allocation5 + $0x678] sm:$0xff]  ;;  %v4190_v20 = vcombine.low %v395_v3, %v399_v22  ;;  %v4054_v29 = vcombine.low %v259_v10, %v263_v12 }
 0x1c7   :  { %3764 = vmatprep.subr.bf16.mxu0 %v4103_v23  ;;  %v4183_v23 = vcombine.high %v387_v14, %v391_v17  ;;  %v255_v26 = vld [vmem:[#allocation5 + $0x238] sm:$0xff] }
 0x1c8   :  { %3804 = vmatpush1.bf16.msra.mxu1 %v4110_v21  ;;  %v4055_v21 = vcombine.high %v259_v10, %v263_v12  ;;  %v379_v27 = vld [vmem:[#allocation5 + $0x618] sm:$0xff]  ;;  %v3498_v10 = vadd.f32 %v4710_v19, %v4708_v15 }
 0x1c9   :  { %3805 = vmatprep.subr.bf16.mxu1 %v4231_v24  ;;  %v251_v24 = vld [vmem:[#allocation5 + $0x218] sm:$0xff] }
 0x1ca   :  { %3765 = vmatpush2.bf16.msra.mxu0 %v4102_v30  ;;  %v383_v28 = vld [vmem:[#allocation5 + $0x638] sm:$0xff]  ;;  %v4182_v30 = vcombine.low %v387_v14, %v391_v17 }
 0x1cb   :  { %3766 = vmatprep.subr.bf16.mxu0 %v4095_v32  ;;  %v4175_v32 = vcombine.high %v379_v27, %v383_v28  ;;  %v503_v35 = vld [vmem:[#allocation5 + $0x9f8] sm:$0xff]  ;;  %v4174_v45 = vcombine.low %v379_v27, %v383_v28 }
 0x1cc   :  { %3806 = vmatpush2.bf16.msra.mxu1 %v4230_v31  ;;  %v4047_v31 = vcombine.high %v251_v24, %v255_v26  ;;  %v627_v36 = vld [vmem:[#allocation5 + $0xdd8] sm:$0xff] }
 0x1cd   :  { %3807 = vmatprep.subr.bf16.mxu1 %v4223_v34  ;;  %v499_v34 = vld [vmem:[#allocation5 + $0x9d8] sm:$0xff] }
 0x1ce   :  { %3767 = vmatpush2.bf16.msra.mxu0 %v4094_v11  ;;  %v631_v38 = vld [vmem:[#allocation5 + $0xdf8] sm:$0xff]  ;;  %v64_v11 = vsub.s32 1, %v4619_v43  ;;  %v4295_v57 = vcombine.high %v499_v34, %v503_v35  ;;  %v4294_v55 = vcombine.low %v499_v34, %v503_v35 }
 0x1cf   :  { %3768 = vmatprep.subr.bf16.mxu0 %v4087_v16  ;;  %v4716_v16 = vld [vmem:[#allocation7] sm:$0xff]  ;;  %v4423_v46 = vcombine.high %v627_v36, %v631_v38  ;;  %v483_v2 = vld [vmem:[#allocation5 + $0x958] sm:$0xff] }
 0x1d0   :  { %3808 = vmatpush2.bf16.msra.mxu1 %v4222_v41  ;;  %v4046_v41 = vcombine.low %v251_v24, %v255_v26  ;;  %v61_v4 = vrot.slane %v4716_v16, %v60_v40  ;;  %v65_v52 = vrot.slane %v4716_v16, %v64_v11  ;;  %v487_v3 = vld [vmem:[#allocation5 + $0x978] sm:$0xff] }
 0x1d1   :  { %3809 = vmatprep.subr.bf16.mxu1 %v4215_v42  ;;  %v68_v42 = vsub.s32 2, %v4619_v43  ;;  %v479_v24 = vld [vmem:[#allocation5 + $0x938] sm:$0xff]  ;;  %v4278_v19 = vcombine.low %v483_v2, %v487_v3 }
 0x1d2   :  { %3769 = vmatpush2.bf16.msra.mxu0 %v4086_v5  ;;  %v491_v5 = vld [vmem:[#allocation5 + $0x998] sm:$0xff] }
 0x1d3   :  { %3770 = vmatprep.subr.bf16.mxu0 %v4079_v50  ;;  %v619_v50 = vld [vmem:[#allocation5 + $0xd98] sm:$0xff]  ;;  %v69_v56 = vrot.slane %v4716_v16, %v68_v42  ;;  %v3928_v42 = vrot.slane %v3920_v54, %v4622_v53 }
 0x1d4   :  { %3810 = vmatpush2.bf16.msra.mxu1 %v4214_v49  ;;  %v495_v49 = vld [vmem:[#allocation5 + $0x9b8] sm:$0xff] }
 0x1d5   :  { %3811 = vmatprep.subr.bf16.mxu1 %v4207_v51  ;;  %v623_v51 = vld [vmem:[#allocation5 + $0xdb8] sm:$0xff] }
 0x1d6   :  { %3771 = vmatpush2.bf16.msra.mxu0 %v4078_v59  ;;  %v73_v59 = vrot.slane %v4716_v16, %v72_v63  ;;  %v4415_v1 = vcombine.high %v619_v50, %v623_v51  ;;  %v4414_v17 = vcombine.low %v619_v50, %v623_v51  ;;  %v603_v26 = vld [vmem:[#allocation5 + $0xd18] sm:$0xff] }
 0x1d7   :  { %3772 = vmatprep.subr.bf16.mxu0 %v4071_v62  ;;  %v4287_v62 = vcombine.high %v491_v5, %v495_v49  ;;  %v607_v27 = vld [vmem:[#allocation5 + $0xd38] sm:$0xff] }
 0x1d8   :  { %3812 = vmatpush2.bf16.msra.mxu1 %v4206_v60  ;;  %v4422_v60 = vcombine.low %v627_v36, %v631_v38  ;;  %v4399_v38 = vcombine.high %v603_v26, %v607_v27  ;;  %v467_v40 = vld [vmem:[#allocation5 + $0x8d8] sm:$0xff] }
 0x1d9   :  { %3813 = vmatprep.subr.bf16.mxu1 %v4199_v0  ;;  %v3496_v0 = vadd.f32 %v4705_v13, %v4702_v9  ;;  %v91_v9 = vcombine.low %v69_v56, %v73_v59  ;;  %v471_v11 = vld [vmem:[#allocation5 + $0x8f8] sm:$0xff] }
 0x1da   :  { %3773 = vmatpush2.bf16.msra.mxu0 %v4070_v6  ;;  %v4286_v6 = vcombine.low %v491_v5, %v495_v49  ;;  %v4263_v5 = vcombine.high %v467_v40, %v471_v11  ;;  %v459_v51 = vld [vmem:[#allocation5 + $0x898] sm:$0xff]  ;;  %v4262_v56 = vcombine.low %v467_v40, %v471_v11 }
 0x1db   :  { %3774 = vmatprep.subr.bf16.mxu0 %v4063_v25  ;;  %v615_v25 = vld [vmem:[#allocation5 + $0xd78] sm:$0xff] }
 0x1dc   :  { %3814 = vmatpush2.bf16.msra.mxu1 %v4198_v7  ;;  %v611_v7 = vld [vmem:[#allocation5 + $0xd58] sm:$0xff] }
 0x1dd   :  { %3815 = vmatprep.subr.bf16.mxu1 %v4191_v8  ;;  %v90_v8 = vcombine.low %v61_v4, %v65_v52  ;;  %v4406_v34 = vcombine.low %v611_v7, %v615_v25  ;;  %v463_v4 = vld [vmem:[#allocation5 + $0x8b8] sm:$0xff] }
 0x1de   :  { %3775 = vmatpush2.bf16.msra.mxu0 %v4062_v18  ;;  %v4279_v18 = vcombine.high %v483_v2, %v487_v3  ;;  %v587_v52 = vld [vmem:[#allocation5 + $0xc98] sm:$0xff]  ;;  %v4255_v54 = vcombine.high %v459_v51, %v463_v4  ;;  %v4254_v2 = vcombine.low %v459_v51, %v463_v4 }
 0x1df   :  { %3776 = vmatprep.subr.bf16.mxu0 %v4055_v21  ;;  %v4407_v21 = vcombine.high %v611_v7, %v615_v25  ;;  %v443_v7 = vld [vmem:[#allocation5 + $0x818] sm:$0xff] }
 0x1e0   :  { %3816 = vmatpush2.bf16.msra.mxu1 %v4190_v20  ;;  %v447_v25 = vld [vmem:[#allocation5 + $0x838] sm:$0xff] }
 0x1e1   :  { %3817 = vmatprep.subr.bf16.mxu1 %v4183_v23  ;;  %v475_v23 = vld [vmem:[#allocation5 + $0x918] sm:$0xff] }
 0x1e2   :  { %3777 = vmatpush2.bf16.msra.mxu0 %v4054_v29  ;;  %v4271_v35 = vcombine.high %v475_v23, %v479_v24  ;;  %v659_v51 = vld [vmem:[#allocation5 + $0xed8] sm:$0xff] }
 0x1e3   :  { %3778 = vmatprep.subr.bf16.mxu0 %v4047_v31  ;;  %v105_v31 = vrot.slane %v91_v9, %v4622_v53  ;;  %v4239_v9 = vcombine.high %v443_v7, %v447_v25  ;;  %v663_v4 = vld [vmem:[#allocation5 + $0xef8] sm:$0xff] }
 0x1e4   :  { %3818 = vmatpush2.bf16.msra.mxu1 %v4182_v30  ;;  %v98_v30 = vrot.slane %v90_v8, %v4622_v53  ;;  %v571_v8 = vld [vmem:[#allocation5 + $0xc18] sm:$0xff] }
 0x1e5   :  { %3819 = vmatprep.subr.bf16.mxu1 %v4175_v32 }
 0x1e6   :  { %3779 = vmatpush2.bf16.msra.mxu0 %v4046_v41  ;;  %v599_v41 = vld [vmem:[#allocation5 + $0xcf8] sm:$0xff] }
 0x1e7   :  { %3830 = vmatprep.subr.bf16.mxu0 %v4295_v57  ;;  %v106_v57 = vcombine.low %v98_v30, %v105_v31 }
 0x1e8   :  { %3820 = vmatpush2.bf16.msra.mxu1 %v4174_v45  ;;  %v4270_v45 = vcombine.low %v475_v23, %v479_v24 }
 0x1e9   :  { %3871 = vmatprep.subr.bf16.mxu1 %v4423_v46  ;;  %v3536_v22 = vpop.f32.mrf.mxu0  ;;  %3781 = vmatmul.mubr.bf16.vlgmr.msra.gmra.mxu0 %v4650_v33  ;;  %v4398_v46 = vcombine.low %v603_v26, %v607_v27  ;;  %v559_v26 = vld [vmem:[#allocation5 + $0xbb8] sm:$0xff] }
 0x1ea   :  { %v3537_v12 = vadd.f32 %v3536_v22, %v3496_v0  ;;  %3831 = vmatpush1.bf16.msra.mxu0 %v4294_v55  ;;  %3862 = vmatprep.mubr.bf16.mxu0 %v4658_v44  ;;  %v591_v55 = vld [vmem:[#allocation5 + $0xcb8] sm:$0xff] }
 0x1eb   :  { %v3577_v14 = vpop.f32.mrf.mxu1  ;;  %3822 = vmatmul.mubr.bf16.vlgmr.msra.gmra.mxu1 %v4656_v37  ;;  %v3538_v13 = vpop.f32.mrf.mxu0  ;;  %3832 = vmatprep.subr.bf16.mxu0 %v4287_v62  ;;  %v4383_v59 = vcombine.high %v587_v52, %v591_v55  ;;  %v455_v62 = vld [vmem:[#allocation5 + $0x878] sm:$0xff]  ;;  %v4382_v3 = vcombine.low %v587_v52, %v591_v55 }
 0x1ec   :  { %3872 = vmatpush1.bf16.msra.mxu1 %v4422_v60  ;;  %v3539_v20 = vadd.f32 %v3538_v13, %v3498_v10  ;;  %3903 = vmatprep.mubr.bf16.mxu1 %v4661_v47  ;;  %v3578_v37 = vadd.f32 %v3577_v14, %v3537_v12  ;;  %v595_v47 = vld [vmem:[#allocation5 + $0xcd8] sm:$0xff] }
 0x1ed   :  { %v3579_v33 = vpop.f32.mrf.mxu1  ;;  %3873 = vmatprep.subr.bf16.mxu1 %v4415_v1  ;;  %v3540_v15 = vpop.f32.mrf.mxu0  ;;  %v4391_v50 = vcombine.high %v595_v47, %v599_v41  ;;  %v4390_v48 = vcombine.low %v595_v47, %v599_v41  ;;  %v451_v60 = vld [vmem:[#allocation5 + $0x858] sm:$0xff] }
 0x1ee   :  { %v3580_v28 = vadd.f32 %v3579_v33, %v3539_v20  ;;  %3833 = vmatpush1.bf16.msra.mxu0 %v4286_v6  ;;  %v579_v0 = vld [vmem:[#allocation5 + $0xc58] sm:$0xff]  ;;  %v4247_v22 = vcombine.high %v451_v60, %v455_v62  ;;  %v4246_v12 = vcombine.low %v451_v60, %v455_v62 }
 0x1ef   :  { %v3581_v29 = vpop.f32.mrf.mxu1  ;;  %v3541_v32 = vpop.f32.mrf.mxu0  ;;  %3834 = vmatprep.subr.bf16.mxu0 %v4279_v18  ;;  %v583_v1 = vld [vmem:[#allocation5 + $0xc78] sm:$0xff] }
 0x1f0   :  { %3874 = vmatpush1.bf16.msra.mxu1 %v4414_v17  ;;  %v3921_v44 = vcombine.low %v3578_v37, %v3580_v28  ;;  %v4375_v6 = vcombine.high %v579_v0, %v583_v1  ;;  %v575_v10 = vld [vmem:[#allocation5 + $0xc38] sm:$0xff]  ;;  %v4374_v14 = vcombine.low %v579_v0, %v583_v1  ;;  %v4454_v0 = vcombine.low %v659_v51, %v663_v4 }
 0x1f1   :  { %v3582_v36 = vpop.f32.mrf.mxu1  ;;  %3875 = vmatprep.subr.bf16.mxu1 %v4407_v21  ;;  %v4367_v13 = vcombine.high %v571_v8, %v575_v10  ;;  %v563_v17 = vld [vmem:[#allocation5 + $0xbd8] sm:$0xff]  ;;  %v4238_v21 = vcombine.low %v443_v7, %v447_v25  ;;  %v4366_v23 = vcombine.low %v571_v8, %v575_v10 }
 0x1f2   :  { %v3935_v63 = vrot.slane %v3921_v44, %v4622_v53  ;;  %3835 = vmatpush1.bf16.msra.mxu0 %v4278_v19  ;;  %v567_v18 = vld [vmem:[#allocation5 + $0xbf8] sm:$0xff] }
 0x1f3   :  { %3836 = vmatprep.subr.bf16.mxu0 %v4271_v35  ;;  %v691_v20 = vld [vmem:[#allocation5 + $0xfd8] sm:$0xff]  ;;  %v4359_v24 = vcombine.high %v563_v17, %v567_v18  ;;  %v4358_v28 = vcombine.low %v563_v17, %v567_v18 }
 0x1f4   :  { %3876 = vmatpush1.bf16.msra.mxu1 %v4406_v34  ;;  %v3936_v49 = vcombine.low %v3928_v42, %v3935_v63  ;;  %v695_v33 = vld [vmem:[#allocation5 + $0xff8] sm:$0xff] }
 0x1f5   :  { %3877 = vmatprep.subr.bf16.mxu1 %v4399_v38  ;;  %v4487_v15 = vcombine.high %v691_v20, %v695_v33  ;;  %v555_v19 = vld [vmem:[#allocation5 + $0xb98] sm:$0xff]  ;;  %v4486_v29 = vcombine.low %v691_v20, %v695_v33 }
 0x1f6   :  { %3837 = vmatpush1.bf16.msra.mxu0 %v4270_v45  ;;  %v3956_v39 = vadd.f32 %v3936_v49, %v106_v57  ;;  %v683_v27 = vld [vmem:[#allocation5 + $0xf98] sm:$0xff]  ;;  %v4351_v30 = vcombine.high %v555_v19, %v559_v26  ;;  %v4350_v36 = vcombine.low %v555_v19, %v559_v26 }
 0x1f7   :  { %3838 = vmatprep.subr.bf16.mxu0 %v4263_v5  ;;  %v687_v37 = vld [vmem:[#allocation5 + $0xfb8] sm:$0xff] }
 0x1f8   :  { %3878 = vmatpush1.bf16.msra.mxu1 %v4398_v46  ;;  %3958 = vst [vmem:[#allocation8] sm:$0xff] %v3956_v39  ;;  %v4479_v31 = vcombine.high %v683_v27, %v687_v37  ;;  %v547_v32 = vld [vmem:[#allocation5 + $0xb58] sm:$0xff]  ;;  %v4478_v38 = vcombine.low %v683_v27, %v687_v37  ;;  %v4455_v39 = vcombine.high %v659_v51, %v663_v4 }
 0x1f9   :  { %3879 = vmatprep.subr.bf16.mxu1 %v4391_v50  ;;  %v551_v34 = vld [vmem:[#allocation5 + $0xb78] sm:$0xff] }
 0x1fa   :  { %3839 = vmatpush1.bf16.msra.mxu0 %v4262_v56  ;;  %v675_v35 = vld [vmem:[#allocation5 + $0xf58] sm:$0xff]  ;;  %v4343_v40 = vcombine.high %v547_v32, %v551_v34  ;;  %v4342_v45 = vcombine.low %v547_v32, %v551_v34 }
 0x1fb   :  { %3840 = vmatprep.subr.bf16.mxu0 %v4255_v54  ;;  %v679_v44 = vld [vmem:[#allocation5 + $0xf78] sm:$0xff] }
 0x1fc   :  { %3880 = vmatpush1.bf16.msra.mxu1 %v4390_v48  ;;  %v4471_v11 = vcombine.high %v675_v35, %v679_v44  ;;  %v539_v47 = vld [vmem:[#allocation5 + $0xb18] sm:$0xff]  ;;  %v4470_v57 = vcombine.low %v675_v35, %v679_v44 }
 0x1fd   :  { %3881 = vmatprep.subr.bf16.mxu1 %v4383_v59  ;;  %v543_v41 = vld [vmem:[#allocation5 + $0xb38] sm:$0xff] }
 0x1fe   :  { %3841 = vmatpush1.bf16.msra.mxu0 %v4254_v2  ;;  %v667_v42 = vld [vmem:[#allocation5 + $0xf18] sm:$0xff]  ;;  %v4335_v46 = vcombine.high %v539_v47, %v543_v41  ;;  %v4334_v52 = vcombine.low %v539_v47, %v543_v41 }
 0x1ff   :  { %3842 = vmatprep.subr.bf16.mxu0 %v4247_v22  ;;  %v671_v63 = vld [vmem:[#allocation5 + $0xf38] sm:$0xff] }
 0x200   :  { %3882 = vmatpush1.bf16.msra.mxu1 %v4382_v3  ;;  %v4463_v5 = vcombine.high %v667_v42, %v671_v63  ;;  %v531_v49 = vld [vmem:[#allocation5 + $0xad8] sm:$0xff]  ;;  %v4462_v55 = vcombine.low %v667_v42, %v671_v63 }
 0x201   :  { %3883 = vmatprep.subr.bf16.mxu1 %v4375_v6  ;;  %v535_v50 = vld [vmem:[#allocation5 + $0xaf8] sm:$0xff] }
 0x202   :  { %3843 = vmatpush1.bf16.msra.mxu0 %v4246_v12  ;;  %v4327_v56 = vcombine.high %v531_v49, %v535_v50  ;;  %v523_v48 = vld [vmem:[#allocation5 + $0xa98] sm:$0xff]  ;;  %v4326_v62 = vcombine.low %v531_v49, %v535_v50 }
 0x203   :  { %3844 = vmatprep.subr.bf16.mxu0 %v4239_v9  ;;  %v527_v54 = vld [vmem:[#allocation5 + $0xab8] sm:$0xff] }
 0x204   :  { %3884 = vmatpush1.bf16.msra.mxu1 %v4374_v14  ;;  %v651_v59 = vld [vmem:[#allocation5 + $0xe98] sm:$0xff]  ;;  %v4319_v1 = vcombine.high %v523_v48, %v527_v54  ;;  %v4318_v25 = vcombine.low %v523_v48, %v527_v54 }
 0x205   :  { %3885 = vmatprep.subr.bf16.mxu1 %v4367_v13  ;;  %v655_v60 = vld [vmem:[#allocation5 + $0xeb8] sm:$0xff] }
 0x206   :  { %3845 = vmatpush1.bf16.msra.mxu0 %v4238_v21  ;;  %v4447_v2 = vcombine.high %v651_v59, %v655_v60  ;;  %v515_v3 = vld [vmem:[#allocation5 + $0xa58] sm:$0xff]  ;;  %v4446_v8 = vcombine.low %v651_v59, %v655_v60 }
 0x207   :  { %3846 = vmatprep.subr.bf16.mxu0 %v4359_v24  ;;  %v519_v22 = vld [vmem:[#allocation5 + $0xa78] sm:$0xff] }
 0x208   :  { %3886 = vmatpush1.bf16.msra.mxu1 %v4366_v23  ;;  %v643_v6 = vld [vmem:[#allocation5 + $0xe58] sm:$0xff]  ;;  %v4311_v10 = vcombine.high %v515_v3, %v519_v22  ;;  %v4310_v18 = vcombine.low %v515_v3, %v519_v22 }
 0x209   :  { %3887 = vmatprep.subr.bf16.mxu1 %v4487_v15  ;;  %v647_v7 = vld [vmem:[#allocation5 + $0xe78] sm:$0xff] }
 0x20a   :  { %3847 = vmatpush2.bf16.msra.mxu0 %v4358_v28  ;;  %v4439_v12 = vcombine.high %v643_v6, %v647_v7  ;;  %v507_v14 = vld [vmem:[#allocation5 + $0xa18] sm:$0xff]  ;;  %v4438_v20 = vcombine.low %v643_v6, %v647_v7 }
 0x20b   :  { %3848 = vmatprep.subr.bf16.mxu0 %v4351_v30  ;;  %v511_v9 = vld [vmem:[#allocation5 + $0xa38] sm:$0xff] }
 0x20c   :  { %3888 = vmatpush2.bf16.msra.mxu1 %v4486_v29  ;;  %v635_v13 = vld [vmem:[#allocation5 + $0xe18] sm:$0xff]  ;;  %v4303_v33 = vcombine.high %v507_v14, %v511_v9  ;;  %v4302_v23 = vcombine.low %v507_v14, %v511_v9 }
 0x20d   :  { %3889 = vmatprep.subr.bf16.mxu1 %v4479_v31  ;;  %v639_v17 = vld [vmem:[#allocation5 + $0xe38] sm:$0xff] }
 0x20e   :  { %3849 = vmatpush2.bf16.msra.mxu0 %v4350_v36  ;;  %v4431_v21 = vcombine.high %v635_v13, %v639_v17  ;;  %v4430_v24 = vcombine.low %v635_v13, %v639_v17 }
 0x20f   :  { %3850 = vmatprep.subr.bf16.mxu0 %v4343_v40 }
 0x210   :  { %3890 = vmatpush2.bf16.msra.mxu1 %v4478_v38 }
 0x211   :  { %3891 = vmatprep.subr.bf16.mxu1 %v4471_v11 }
 0x212   :  { %3851 = vmatpush2.bf16.msra.mxu0 %v4342_v45 }
 0x213   :  { %3852 = vmatprep.subr.bf16.mxu0 %v4335_v46 }
 0x214   :  { %3892 = vmatpush2.bf16.msra.mxu1 %v4470_v57 }
 0x215   :  { %3893 = vmatprep.subr.bf16.mxu1 %v4463_v5 }
 0x216   :  { %3853 = vmatpush2.bf16.msra.mxu0 %v4334_v52  ;;  %v76_v52 = vsub.s32 4, %v4619_v43 }
 0x217   :  { %3854 = vmatprep.subr.bf16.mxu0 %v4327_v56  ;;  %v84_v56 = vsub.s32 6, %v4619_v43 }
 0x218   :  { %3894 = vmatpush2.bf16.msra.mxu1 %v4462_v55  ;;  %v80_v55 = vsub.s32 5, %v4619_v43  ;;  %v77_v48 = vrot.slane %v4716_v16, %v76_v52 }
 0x219   :  { %3895 = vmatprep.subr.bf16.mxu1 %v4455_v39  ;;  %v88_v39 = vsub.s32 7, %v4619_v43  ;;  %v85_v59 = vrot.slane %v4716_v16, %v84_v56 }
 0x21a   :  { %3855 = vmatpush2.bf16.msra.mxu0 %v4326_v62  ;;  %v81_v54 = vrot.slane %v4716_v16, %v80_v55 }
 0x21b   :  { %3856 = vmatprep.subr.bf16.mxu0 %v4319_v1  ;;  %v89_v60 = vrot.slane %v4716_v16, %v88_v39 }
 0x21c   :  { %3896 = vmatpush2.bf16.msra.mxu1 %v4454_v0  ;;  %v107_v22 = vcombine.low %v77_v48, %v81_v54 }
 0x21d   :  { %3897 = vmatprep.subr.bf16.mxu1 %v4447_v2  ;;  %v108_v6 = vcombine.low %v85_v59, %v89_v60 }
 0x21e   :  { %3857 = vmatpush2.bf16.msra.mxu0 %v4318_v25  ;;  %v115_v9 = vrot.slane %v107_v22, %v4622_v53 }
 0x21f   :  { %3858 = vmatprep.subr.bf16.mxu0 %v4311_v10  ;;  %v122_v13 = vrot.slane %v108_v6, %v4622_v53 }
 0x220   :  { %3898 = vmatpush2.bf16.msra.mxu1 %v4446_v8 }
 0x221   :  { %3899 = vmatprep.subr.bf16.mxu1 %v4439_v12 }
 0x222   :  { %3859 = vmatpush2.bf16.msra.mxu0 %v4310_v18 }
 0x223   :  { %3860 = vmatprep.subr.bf16.mxu0 %v4303_v33 }
 0x224   :  { %3900 = vmatpush2.bf16.msra.mxu1 %v4438_v20 }
 0x225   :  { %3901 = vmatprep.subr.bf16.mxu1 %v4431_v21  ;;  %v123_v21 = vcombine.low %v115_v9, %v122_v13 }
 0x226   :  { %3861 = vmatpush2.bf16.msra.mxu0 %v4302_v23 }
 0x228   :  { %3902 = vmatpush2.bf16.msra.mxu1 %v4430_v24 }
 0x229   :  { %v3618_v15 = vpop.f32.mrf.mxu0  ;;  %3863 = vmatmul.mubr.bf16.vlgmr.msra.gmra.mxu0 %v4668_v58 }
 0x22b   :  { %v3659_v19 = vpop.f32.mrf.mxu1  ;;  %3904 = vmatmul.mubr.bf16.vlgmr.msra.gmra.mxu1 %v4672_v61  ;;  %v3620_v27 = vpop.f32.mrf.mxu0 }
 0x22c   :  { %v3660_v26 = vadd.f32 %v3659_v19, %v3618_v15 }
 0x22d   :  { %v3661_v37 = vpop.f32.mrf.mxu1  ;;  %v3622_v29 = vpop.f32.mrf.mxu0 }
 0x22e   :  { %v3662_v28 = vadd.f32 %v3661_v37, %v3620_v27 }
 0x22f   :  { %v3663_v30 = vpop.f32.mrf.mxu1  ;;  %v3623_v31 = vpop.f32.mrf.mxu0 }
 0x231   :  { %v3664_v32 = vpop.f32.mrf.mxu1 }
 0x269   :  { %v3700_v34 = vpop.f32.mrf.mxu0 }
 0x26a   :  { %v3701_v35 = vadd.f32 %v3700_v34, %v3660_v26 }
 0x26b   :  { %v3741_v44 = vpop.f32.mrf.mxu1  ;;  %v3702_v36 = vpop.f32.mrf.mxu0 }
 0x26c   :  { %v3742_v38 = vadd.f32 %v3741_v44, %v3701_v35  ;;  %v3703_v40 = vadd.f32 %v3702_v36, %v3662_v28 }
 0x26d   :  { %v3743_v11 = vpop.f32.mrf.mxu1  ;;  %v3704_v47 = vpop.f32.mrf.mxu0 }
 0x26e   :  { %v3744_v58 = vadd.f32 %v3743_v11, %v3703_v40 }
 0x26f   :  { %v3745_v41 = vpop.f32.mrf.mxu1  ;;  %v3705_v42 = vpop.f32.mrf.mxu0 }
 0x270   :  { %v3937_v61 = vcombine.low %v3742_v38, %v3744_v58 }
 0x271   :  { %v3746_v63 = vpop.f32.mrf.mxu1 }
 0x272   :  { %v3945_v20 = vrot.slane %v3937_v61, %v4622_v53 }
 0x2a9   :  { %v3782_v45 = vpop.f32.mrf.mxu0 }
 0x2ab   :  { %v3823_v57 = vpop.f32.mrf.mxu1  ;;  %v3784_v46 = vpop.f32.mrf.mxu0 }
 0x2ac   :  { %v3824_v62 = vadd.f32 %v3823_v57, %v3782_v45 }
 0x2ad   :  { %v3825_v5 = vpop.f32.mrf.mxu1  ;;  %v3786_v49 = vpop.f32.mrf.mxu0 }
 0x2ae   :  { %v3826_v1 = vadd.f32 %v3825_v5, %v3784_v46 }
 0x2af   :  { %v3827_v50 = vpop.f32.mrf.mxu1  ;;  %v3787_v51 = vpop.f32.mrf.mxu0 }
 0x2b1   :  { %v3828_v4 = vpop.f32.mrf.mxu1 }
 0x2e9   :  { %v3864_v0 = vpop.f32.mrf.mxu0 }
 0x2ea   :  { %v3865_v2 = vadd.f32 %v3864_v0, %v3824_v62 }
 0x2eb   :  { %v3905_v3 = vpop.f32.mrf.mxu1  ;;  %v3866_v7 = vpop.f32.mrf.mxu0 }
 0x2ec   :  { %v3867_v25 = vadd.f32 %v3866_v7, %v3826_v1  ;;  %v3906_v43 = vadd.f32 %v3905_v3, %v3865_v2 }
 0x2ed   :  { %v3907_v8 = vpop.f32.mrf.mxu1  ;;  %v3868_v10 = vpop.f32.mrf.mxu0 }
 0x2ee   :  { %v3908_v12 = vadd.f32 %v3907_v8, %v3867_v25 }
 0x2ef   :  { %v3909_v14 = vpop.f32.mrf.mxu1  ;;  %v3869_v17 = vpop.f32.mrf.mxu0 }
 0x2f0   :  { %v3938_v16 = vcombine.low %v3906_v43, %v3908_v12 }
 0x2f1   :  { %v3910_v18 = vpop.f32.mrf.mxu1 }
 0x2f2   :  { %v3952_v33 = vrot.slane %v3938_v16, %v4622_v53 }
 0x2f4   :  { %v3953_v23 = vcombine.low %v3945_v20, %v3952_v33 }
 0x2f6   :  { %v3957_v24 = vadd.f32 %v3953_v23, %v123_v21 }
 0x2f8   :  { %3959 = vst [vmem:[#allocation8 + $0x8] sm:$0xff] %v3957_v24 }
 0x2f9   :  { %4568 = shalt.err (!%p4565_p5)
}
 0x2fa   :  { %3969 = dma.vmem_to_hbm [thread:$0]  %s3967_s2, 256, %s4759_s3, [#allocation4]  }
 0x2fb   :  { %4581 = dma.done.wait [#allocation4], 256  }
 0x2fc   :  { %4582 = vsyncadd [#allocation4], 4294967040 }
 0x2fd   :  { %3973 = vsyncpa [#allocation3], 1 }
 0x2fe   :  { %3974 = vsyncpa [#allocation6], 1 }
 0x2ff   :  { %3975 = vsyncpa [#allocation4], 1 }

</bundles_post_ra>
